<compile_context>
chip_gen: v6e
topology: v6e:2x2x1
jax: 0.10.0
libtpu: 0.0.40
codegen_flags: <defaults>
</compile_context>

<pallas_src>
import functools

import jax
import jax.numpy as jnp
from jax import lax
from jax.experimental import pallas as pl
from jax.experimental.pallas import tpu as pltpu

HIDDEN = 768     # fixed by nn.Linear(768, 768) in the module
LPAD = 256       # out_proj padded to a lane-dense / MXU-256-friendly width
BM = 16          # batch tile (bf16 sublane group); use 128-512 for real serving batches


def _head_kernel(num_labels, batch, x_ref, lab_ref, w1_ref, b1_ref, w2_ref, b2_ref,
                 pooled_ref, logits_ref, nll_ref):
    # pooler_output -> tanh(dense(x)) -> (dropout = identity in eval) -> out_proj
    i = pl.program_id(0)

    x = x_ref[...]                                                  # (BM, HIDDEN) bf16
    h = jnp.tanh(
        jnp.dot(x, w1_ref[...], preferred_element_type=jnp.float32) + b1_ref[...]
    )                                                               # f32
    pooled_ref[...] = h.astype(pooled_ref.dtype)                    # post-tanh "pooler_output"

    logits = (
        jnp.dot(h.astype(jnp.bfloat16), w2_ref[...],
                preferred_element_type=jnp.float32) + b2_ref[...]
    )                                                               # (BM, LPAD) f32
    logits_ref[...] = logits.astype(logits_ref.dtype)

    # CrossEntropy over the first `num_labels` columns; padded columns masked out
    # of the log-sum-exp (exp(-inf) == 0, no extra where needed).
    col = lax.broadcasted_iota(jnp.int32, logits.shape, 1)
    masked = jnp.where(col < num_labels, logits, -jnp.inf)
    m = jnp.max(masked, axis=-1, keepdims=True)
    lse = m + jnp.log(jnp.sum(jnp.exp(masked - m), axis=-1, keepdims=True))

    # Picked logit via label compare — no one-hot input stream needed.
    picked = jnp.sum(jnp.where(col == lab_ref[...], logits, 0.0),
                     axis=-1, keepdims=True)                        # (BM, 1)

    # Mask padded batch rows; the mean over the REAL batch is taken outside.
    row = lax.broadcasted_iota(jnp.int32, lse.shape, 0) + i * lse.shape[0]
    nll_ref[...] = jnp.where(row < batch, lse - picked, 0.0)


def prepare_params(w1, b1, w2, b2, *, num_labels):
    """One-time weight prep (keep OUT of the per-step call path):
    bf16 weights, out_proj zero-padded to a lane-dense LPAD-wide tile, f32 biases."""
    w1b = w1.astype(jnp.bfloat16)
    b1r = b1.astype(jnp.float32).reshape(1, HIDDEN)
    w2p = jnp.zeros((HIDDEN, LPAD), jnp.bfloat16).at[:, :num_labels].set(
        w2.astype(jnp.bfloat16))
    b2p = jnp.zeros((1, LPAD), jnp.float32).at[0, :num_labels].set(
        b2.astype(jnp.float32))
    return w1b, b1r, w2p, b2p


@functools.partial(jax.jit, static_argnames=("num_labels",))
def classifier_head(pooler_output, labels, params, *, num_labels):
    """Returns (loss, logits, pooled) mirroring Classifier.forward (labels given)."""
    w1b, b1r, w2p, b2p = params
    B = pooler_output.shape[0]
    bpad = BM * pl.cdiv(B, BM)
    grid = (bpad // BM,)

    # Tiny per-call glue: pad batch to a full sublane-group tile, labels to (bpad, 1).
    xp = jnp.zeros((bpad, HIDDEN), jnp.bfloat16).at[:B].set(
        pooler_output.astype(jnp.bfloat16))
    labp = jnp.zeros((bpad, 1), jnp.int32).at[:B, 0].set(labels.astype(jnp.int32))

    kernel = functools.partial(_head_kernel, num_labels, B)
    pooled_p, logits_p, nll = pl.pallas_call(
        kernel,
        grid=grid,
        in_specs=[
            pl.BlockSpec((BM, HIDDEN), lambda i: (i, 0)),       # activations (batch-tiled)
            pl.BlockSpec((BM, 1), lambda i: (i, 0)),            # labels (batch-tiled)
            pl.BlockSpec((HIDDEN, HIDDEN), lambda i: (0, 0)),   # w1: VMEM-resident
            pl.BlockSpec((1, HIDDEN), lambda i: (0, 0)),        # b1: VMEM-resident
            pl.BlockSpec((HIDDEN, LPAD), lambda i: (0, 0)),     # w2 (padded): resident
            pl.BlockSpec((1, LPAD), lambda i: (0, 0)),          # b2 (padded): resident
        ],
        out_specs=(
            pl.BlockSpec((BM, HIDDEN), lambda i: (i, 0)),       # pooled (post-tanh)
            pl.BlockSpec((BM, LPAD), lambda i: (i, 0)),         # padded logits
            pl.BlockSpec((BM, 1), lambda i: (i, 0)),            # per-row masked NLL
        ),
        out_shape=(
            jax.ShapeDtypeStruct((bpad, HIDDEN), jnp.float32),
            jax.ShapeDtypeStruct((bpad, LPAD), jnp.float32),
            jax.ShapeDtypeStruct((bpad, 1), jnp.float32),
        ),
        compiler_params=pltpu.CompilerParams(
            dimension_semantics=("parallel",)),                 # v7x: both TensorCores
    )(xp, labp, w1b, b1r, w2p, b2p)

    loss = jnp.sum(nll) / B                     # CE mean over the REAL batch only
    return loss, logits_p[:B, :num_labels], pooled_p[:B]


def _reference(pooler_output, w1, b1, w2, b2, labels):
    # Numerics-matched reference: bf16 matmul operands, f32 accumulation,
    # f32 elementwise — same precision policy as the kernel.
    h = jnp.tanh(jnp.dot(pooler_output.astype(jnp.bfloat16), w1.astype(jnp.bfloat16),
                         preferred_element_type=jnp.float32) + b1)
    logits = jnp.dot(h.astype(jnp.bfloat16), w2.astype(jnp.bfloat16),
                     preferred_element_type=jnp.float32) + b2
    logp = jax.nn.log_softmax(logits, axis=-1)
    loss = -jnp.mean(jnp.take_along_axis(logp, labels[:, None], axis=-1))
    return loss, logits, h


if __name__ == "__main__":
    B = 2
    NUM_LABELS = 4

    key = jax.random.PRNGKey(0)
    k_x, k_w1, k_b1, k_w2, k_b2 = jax.random.split(key, 5)

    # Deterministic synthetic parameters (shapes from the module's __init__).
    pooler_output = jax.random.normal(k_x, (B, HIDDEN), jnp.float32)
    w1 = jax.random.normal(k_w1, (HIDDEN, HIDDEN), jnp.float32) * 0.02
    b1 = jax.random.normal(k_b1, (HIDDEN,), jnp.float32) * 0.02
    w2 = jax.random.normal(k_w2, (HIDDEN, NUM_LABELS), jnp.float32) * 0.02
    b2 = jax.random.normal(k_b2, (NUM_LABELS,), jnp.float32) * 0.02
    labels = jnp.array([1, 3], dtype=jnp.int32)

    params = prepare_params(w1, b1, w2, b2, num_labels=NUM_LABELS)  # one-time prep
    loss, logits, pooled = classifier_head(
        pooler_output, labels, params, num_labels=NUM_LABELS)
    jax.block_until_ready((loss, logits, pooled))

    ref_loss, ref_logits, ref_pooled = _reference(pooler_output, w1, b1, w2, b2, labels)
    assert jnp.allclose(pooled, ref_pooled, atol=1e-3, rtol=1e-3)
    assert jnp.allclose(logits, ref_logits, atol=1e-3, rtol=1e-3)
    assert jnp.allclose(loss, ref_loss, atol=1e-3, rtol=1e-3)

    print("KERNEL_OK")
</pallas_src>

<mosaic_0001>
module attributes {stable_mosaic.version = 11 : i64} {
  func.func @_head_kernel(%arg0: i32, %arg1: memref<16x768xbf16, #tpu.memory_space<vmem>>, %arg2: memref<16x1xi32, #tpu.memory_space<vmem>>, %arg3: memref<768x768xbf16, #tpu.memory_space<vmem>>, %arg4: memref<1x768xf32, #tpu.memory_space<vmem>>, %arg5: memref<768x256xbf16, #tpu.memory_space<vmem>>, %arg6: memref<1x256xf32, #tpu.memory_space<vmem>>, %arg7: memref<16x768xf32, #tpu.memory_space<vmem>>, %arg8: memref<16x256xf32, #tpu.memory_space<vmem>>, %arg9: memref<16x1xf32, #tpu.memory_space<vmem>>) attributes {dimension_semantics = [#tpu.dimension_semantics<parallel>], iteration_bounds = array<i64: 1>, scalar_prefetch = 0 : i64, scratch_operands = 0 : i64, tpu.core_type = #tpu.core_type<tc>, window_params = [{transform_indices = @transform_0, window_bounds = array<i64: 16, 768>}, {transform_indices = @transform_1, window_bounds = array<i64: 16, 1>}, {pipeline_mode = #tpu.pipeline_mode<synchronous>, transform_indices = @transform_2, window_bounds = array<i64: 768, 768>}, {pipeline_mode = #tpu.pipeline_mode<synchronous>, transform_indices = @transform_3, window_bounds = array<i64: 1, 768>}, {pipeline_mode = #tpu.pipeline_mode<synchronous>, transform_indices = @transform_4, window_bounds = array<i64: 768, 256>}, {pipeline_mode = #tpu.pipeline_mode<synchronous>, transform_indices = @transform_5, window_bounds = array<i64: 1, 256>}, {transform_indices = @transform_6, window_bounds = array<i64: 16, 768>}, {transform_indices = @transform_7, window_bounds = array<i64: 16, 256>}, {transform_indices = @transform_8, window_bounds = array<i64: 16, 1>}]} {
    %c0 = arith.constant 0 : index
    %c0_0 = arith.constant 0 : index
    %0 = vector.load %arg1[%c0, %c0_0] : memref<16x768xbf16, #tpu.memory_space<vmem>>, vector<16x768xbf16>
    %c0_1 = arith.constant 0 : index
    %c0_2 = arith.constant 0 : index
    %1 = vector.load %arg3[%c0_1, %c0_2] : memref<768x768xbf16, #tpu.memory_space<vmem>>, vector<768x768xbf16>
    %cst = arith.constant dense<0.000000e+00> : vector<16x768xf32>
    %2 = tpu.matmul %0, %1, %cst {dimension_numbers = #tpu.dot_dimension_numbers<[1], [0], [0], [1], [0, 0, 1, 1], [], []>} : vector<16x768xbf16>, vector<768x768xbf16>, vector<16x768xf32> -> vector<16x768xf32>
    %c0_3 = arith.constant 0 : index
    %c0_4 = arith.constant 0 : index
    %3 = vector.load %arg4[%c0_3, %c0_4] : memref<1x768xf32, #tpu.memory_space<vmem>>, vector<1x768xf32>
    %4 = vector.broadcast %3 : vector<1x768xf32> to vector<16x768xf32>
    %5 = arith.addf %2, %4 : vector<16x768xf32>
    %6 = math.tanh %5 : vector<16x768xf32>
    %c0_5 = arith.constant 0 : index
    %c0_6 = arith.constant 0 : index
    %7 = vector.load %arg7[%c0_5, %c0_6] : memref<16x768xf32, #tpu.memory_space<vmem>>, vector<16x768xf32>
    tpu.vector_store %arg7[%c0_5, %c0_6], %6 {strides = array<i32>} : memref<16x768xf32, #tpu.memory_space<vmem>>, vector<16x768xf32>,
    %8 = arith.truncf %6 : vector<16x768xf32> to vector<16x768xbf16>
    %c0_7 = arith.constant 0 : index
    %c0_8 = arith.constant 0 : index
    %9 = vector.load %arg5[%c0_7, %c0_8] : memref<768x256xbf16, #tpu.memory_space<vmem>>, vector<768x256xbf16>
    %cst_9 = arith.constant dense<0.000000e+00> : vector<16x256xf32>
    %10 = tpu.matmul %8, %9, %cst_9 {dimension_numbers = #tpu.dot_dimension_numbers<[1], [0], [0], [1], [0, 0, 1, 1], [], []>} : vector<16x768xbf16>, vector<768x256xbf16>, vector<16x256xf32> -> vector<16x256xf32>
    %c0_10 = arith.constant 0 : index
    %c0_11 = arith.constant 0 : index
    %11 = vector.load %arg6[%c0_10, %c0_11] : memref<1x256xf32, #tpu.memory_space<vmem>>, vector<1x256xf32>
    %12 = vector.broadcast %11 : vector<1x256xf32> to vector<16x256xf32>
    %13 = arith.addf %10, %12 : vector<16x256xf32>
    %c0_12 = arith.constant 0 : index
    %c0_13 = arith.constant 0 : index
    %14 = vector.load %arg8[%c0_12, %c0_13] : memref<16x256xf32, #tpu.memory_space<vmem>>, vector<16x256xf32>
    tpu.vector_store %arg8[%c0_12, %c0_13], %13 {strides = array<i32>} : memref<16x256xf32, #tpu.memory_space<vmem>>, vector<16x256xf32>,
    %15 = tpu.iota {dimensions = array<i32: 1>} : vector<16x256xi32>
    %c4_i32 = arith.constant 4 : i32
    %16 = vector.broadcast %c4_i32 : i32 to vector<16x256xi32>
    %17 = arith.cmpi slt, %15, %16 : vector<16x256xi32>
    %cst_14 = arith.constant 0xFF800000 : f32
    %18 = vector.broadcast %cst_14 : f32 to vector<16x256xf32>
    %19 = arith.select %17, %13, %18 : vector<16x256xi1>, vector<16x256xf32>
    %cst_15 = arith.constant dense<0xFF800000> : vector<16xf32>
    %20 = vector.multi_reduction <maximumf>, %19, %cst_15 [1] : vector<16x256xf32> to vector<16xf32>
    %21 = vector.shape_cast %20 : vector<16xf32> to vector<16x1xf32>
    %22 = vector.broadcast %21 : vector<16x1xf32> to vector<16x256xf32>
    %23 = arith.subf %19, %22 : vector<16x256xf32>
    %24 = math.exp %23 : vector<16x256xf32>
    %cst_16 = arith.constant dense<0.000000e+00> : vector<16xf32>
    %25 = vector.multi_reduction <add>, %24, %cst_16 [1] : vector<16x256xf32> to vector<16xf32>
    %26 = vector.shape_cast %25 : vector<16xf32> to vector<16x1xf32>
    %27 = math.log %26 : vector<16x1xf32>
    %28 = arith.addf %21, %27 : vector<16x1xf32>
    %c0_17 = arith.constant 0 : index
    %c0_18 = arith.constant 0 : index
    %29 = vector.load %arg2[%c0_17, %c0_18] : memref<16x1xi32, #tpu.memory_space<vmem>>, vector<16x1xi32>
    %30 = vector.broadcast %29 : vector<16x1xi32> to vector<16x256xi32>
    %31 = arith.cmpi eq, %15, %30 : vector<16x256xi32>
    %cst_19 = arith.constant 0.000000e+00 : f32
    %32 = vector.broadcast %cst_19 : f32 to vector<16x256xf32>
    %33 = arith.select %31, %13, %32 : vector<16x256xi1>, vector<16x256xf32>
    %cst_20 = arith.constant dense<0.000000e+00> : vector<16xf32>
    %34 = vector.multi_reduction <add>, %33, %cst_20 [1] : vector<16x256xf32> to vector<16xf32>
    %35 = vector.shape_cast %34 : vector<16xf32> to vector<16x1xf32>
    %36 = tpu.iota {dimensions = array<i32: 0>} : vector<16x1xi32>
    %c16_i32 = arith.constant 16 : i32
    %37 = arith.muli %arg0, %c16_i32 : i32
    %38 = vector.broadcast %37 : i32 to vector<16x1xi32>
    %39 = arith.addi %36, %38 : vector<16x1xi32>
    %c2_i32 = arith.constant 2 : i32
    %40 = vector.broadcast %c2_i32 : i32 to vector<16x1xi32>
    %41 = arith.cmpi slt, %39, %40 : vector<16x1xi32>
    %42 = arith.subf %28, %35 : vector<16x1xf32>
    %cst_21 = arith.constant 0.000000e+00 : f32
    %43 = vector.broadcast %cst_21 : f32 to vector<16x1xf32>
    %44 = arith.select %41, %42, %43 : vector<16x1xi1>, vector<16x1xf32>
    %c0_22 = arith.constant 0 : index
    %c0_23 = arith.constant 0 : index
    %45 = vector.load %arg9[%c0_22, %c0_23] : memref<16x1xf32, #tpu.memory_space<vmem>>, vector<16x1xf32>
    tpu.vector_store %arg9[%c0_22, %c0_23], %44 {strides = array<i32>} : memref<16x1xf32, #tpu.memory_space<vmem>>, vector<16x1xf32>,
    return
  }
  func.func @transform_0(%arg0: i32) -> (i32, i32) {
    %c0_i32 = arith.constant 0 : i32
    %c0_i32_0 = arith.constant 0 : i32
    return %arg0, %c0_i32 : i32, i32
  }
  func.func @transform_1(%arg0: i32) -> (i32, i32) {
    %c0_i32 = arith.constant 0 : i32
    %c0_i32_0 = arith.constant 0 : i32
    return %arg0, %c0_i32 : i32, i32
  }
  func.func @transform_2(%arg0: i32) -> (i32, i32) {
    %c0_i32 = arith.constant 0 : i32
    %c0_i32_0 = arith.constant 0 : i32
    %c0_i32_1 = arith.constant 0 : i32
    return %c0_i32, %c0_i32_0 : i32, i32
  }
  func.func @transform_3(%arg0: i32) -> (i32, i32) {
    %c0_i32 = arith.constant 0 : i32
    %c0_i32_0 = arith.constant 0 : i32
    %c0_i32_1 = arith.constant 0 : i32
    return %c0_i32, %c0_i32_0 : i32, i32
  }
  func.func @transform_4(%arg0: i32) -> (i32, i32) {
    %c0_i32 = arith.constant 0 : i32
    %c0_i32_0 = arith.constant 0 : i32
    %c0_i32_1 = arith.constant 0 : i32
    return %c0_i32, %c0_i32_0 : i32, i32
  }
  func.func @transform_5(%arg0: i32) -> (i32, i32) {
    %c0_i32 = arith.constant 0 : i32
    %c0_i32_0 = arith.constant 0 : i32
    %c0_i32_1 = arith.constant 0 : i32
    return %c0_i32, %c0_i32_0 : i32, i32
  }
  func.func @transform_6(%arg0: i32) -> (i32, i32) {
    %c0_i32 = arith.constant 0 : i32
    %c0_i32_0 = arith.constant 0 : i32
    return %arg0, %c0_i32 : i32, i32
  }
  func.func @transform_7(%arg0: i32) -> (i32, i32) {
    %c0_i32 = arith.constant 0 : i32
    %c0_i32_0 = arith.constant 0 : i32
    return %arg0, %c0_i32 : i32, i32
  }
  func.func @transform_8(%arg0: i32) -> (i32, i32) {
    %c0_i32 = arith.constant 0 : i32
    %c0_i32_0 = arith.constant 0 : i32
    return %arg0, %c0_i32 : i32, i32
  }
}

</mosaic_0001>

<bundles_post_ra>
// kernel: classifier_head.1
= control target key start
LH: loop header
LB: loop body
LE: loop exit
PB: predicated region body
PF: predicated region fallthrough
CT: control target
= control target key end

     0   :  { %14 = vsyncpa [#allocation3], 0  ;;  %s4418_s0 = inlined_call_operand.vmem [shape: bf16[16,768], index: 0, kind: input, shape index: {}]   ;;  %s4419_s1 = inlined_call_operand.vmem [shape: s32[16,1], index: 1, kind: input, shape index: {}]   ;;  %s4420_s2 = inlined_call_operand.hbm [shape: bf16[768,768], index: 2, kind: input, shape index: {}]   ;;  %s4421_s3 = inlined_call_operand.hbm [shape: f32[1,768], index: 3, kind: input, shape index: {}]   ;;  %s4422_s4 = inlined_call_operand.hbm [shape: bf16[768,256], index: 4, kind: input, shape index: {}]   ;;  %s4423_s5 = inlined_call_operand.hbm [shape: f32[1,256], index: 5, kind: input, shape index: {}]   ;;  %s4424_s6 = inlined_call_operand.vmem [shape: f32[16,768], index: 6, kind: output, shape index: {0}]   ;;  %s4425_s7 = inlined_call_operand.vmem [shape: f32[16,256], index: 7, kind: output, shape index: {1}]   ;;  %s4426_s8 = inlined_call_operand.vmem [shape: f32[16,1], index: 8, kind: output, shape index: {2}]  }
   0x1   :  { %15 = vsyncpa [#allocation5], 0 }
   0x2   :  { %16 = vsyncpa [#allocation8], 0  ;;  %s4211_s27 = smov [#allocation4]   ;;  %s4212_s29 = smov [#allocation2]  }
   0x3   :  { %s39_s28 = sshll.u32 %s4211_s27, 4  ;;  %s26_s30 = sshll.u32 %s4212_s29, 4  ;;  %s40_s28 = int_to_ptr.vmem [resolvable:$true] %s39_s28  ;;  %s27_s30 = int_to_ptr.vmem [resolvable:$true] %s26_s30 }
   0x4   :  { %s4133_s9 = scalar_lea.vmem %s40_s28, 96  ;;  %p4138_p1 = scmp.lt.s32.totalorder %s40_s28, %s40_s28 }
   0x5   :  { %p4134_p0 = scmp.ne.s32.totalorder %s40_s28, %s4133_s9  ;;  %p4139_p2 = scmp.lt.s32.totalorder %s4133_s9, %s4133_s9 }
   0x7   :  { %p4140_p3 = por %p4139_p2, %p4138_p1 }
   0x9   :  { %p4141_p4 = pnand %p4140_p3, %p4134_p0 }
   0xb   :  { %4144 = shalt.err (!%p4141_p4)
}
   0xc   :  { %42 = dma.hbm_to_vmem [thread:$0]  %s4421_s3, 96, %s40_s28, [#allocation5]  }
   0xd   :  { %s4153_s12 = scalar_lea.vmem %s27_s30, 36864  ;;  %p4158_p6 = scmp.lt.s32.totalorder %s27_s30, %s27_s30 }
   0xe   :  { %p4154_p5 = scmp.ne.s32.totalorder %s27_s30, %s4153_s12  ;;  %p4159_p7 = scmp.lt.s32.totalorder %s4153_s12, %s4153_s12 }
  0x10   :  { %p4160_p8 = por %p4159_p7, %p4158_p6 }
  0x12   :  { %p4161_p9 = pnand %p4160_p8, %p4154_p5 }
  0x14   :  { %4164 = shalt.err (!%p4161_p9)
}
  0x15   :  { %s4213_s13 = smov 384   ;;  %s4214_s14 = smov 24  }
  0x16   :  { %32 = dma.hbm_to_vmem [thread:$0]  %s4420_s2, 36864, %s27_s30, [#allocation3], %s4213_s13, %s4213_s13, %s4214_s14  }
  0x17   :  { %s4215_s17 = smov [#allocation6]  }
  0x18   :  { %s48_s18 = sshll.u32 %s4215_s17, 4  ;;  %s49_s18 = int_to_ptr.vmem [resolvable:$true] %s48_s18 }
  0x19   :  { %s4173_s19 = scalar_lea.vmem %s49_s18, 12288  ;;  %p4178_p11 = scmp.lt.s32.totalorder %s49_s18, %s49_s18 }
  0x1a   :  { %p4174_p10 = scmp.ne.s32.totalorder %s49_s18, %s4173_s19  ;;  %p4179_p12 = scmp.lt.s32.totalorder %s4173_s19, %s4173_s19 }
  0x1c   :  { %p4180_p13 = por %p4179_p12, %p4178_p11 }
  0x1e   :  { %p4181_p0 = pnand %p4180_p13, %p4174_p10 }
  0x20   :  { %4184 = shalt.err (!%p4181_p0)
}
  0x21   :  { %s4216_s3 = smov 128   ;;  %s4217_s20 = smov 8  }
  0x22   :  { %54 = dma.hbm_to_vmem [thread:$0]  %s4422_s4, 12288, %s49_s18, [#allocation5], %s4216_s3, %s4216_s3, %s4217_s20  }
  0x23   :  { %s4218_s23 = smov [#allocation7]  }
  0x24   :  { %s61_s24 = sshll.u32 %s4218_s23, 4  ;;  %s62_s24 = int_to_ptr.vmem [resolvable:$true] %s61_s24 }
  0x25   :  { %s4193_s2 = scalar_lea.vmem %s62_s24, 32  ;;  %p4198_p2 = scmp.lt.s32.totalorder %s62_s24, %s62_s24 }
  0x26   :  { %p4194_p1 = scmp.ne.s32.totalorder %s62_s24, %s4193_s2  ;;  %p4199_p3 = scmp.lt.s32.totalorder %s4193_s2, %s4193_s2 }
  0x28   :  { %p4200_p4 = por %p4199_p3, %p4198_p2 }
  0x2a   :  { %p4201_p5 = pnand %p4200_p4, %p4194_p1 }
  0x2c   :  { %4204 = shalt.err (!%p4201_p5)
}
  0x2d   :  { %64 = dma.hbm_to_vmem [thread:$0]  %s4423_s5, 32, %s62_s24, [#allocation8]  }
  0x2e   :  { %4205 = dma.done.wait [#allocation3], 36864  }
  0x2f   :  { %4206 = vsyncadd [#allocation3], 4294930432 }
  0x30   :  { %4207 = dma.done.wait [#allocation5], 12384  }
  0x31   :  { %4208 = vsyncadd [#allocation5], 4294954912 }
  0x32   :  { %4209 = dma.done.wait [#allocation8], 32  }
  0x33   :  { %4210 = vsyncadd [#allocation8], 4294967264  ;;  %v3504_v0 = vld [vmem:[#allocation2 + $0x154] ss:$24 sps:$4 sm:$0xff]   ;;  %v3506_v1 = vld [vmem:[#allocation2 + $0x150] ss:$24 sps:$4 sm:$0xff]  }
  0x34   :  { %1873 = vmatprep.subr.bf16.mxu0 %v3504_v0  ;;  %v3507_v2 = vld [vmem:[#allocation2 + $0x454] ss:$24 sps:$4 sm:$0xff]   ;;  %v3509_v3 = vld [vmem:[#allocation2 + $0x450] ss:$24 sps:$4 sm:$0xff]   ;;  %v3510_v4 = vld [vmem:[#allocation2 + $0x124] ss:$24 sps:$4 sm:$0xff]  }
  0x35   :  { %1874 = vmatpush1.bf16.msra.mxu0 %v3506_v1  ;;  %v3512_v5 = vld [vmem:[#allocation2 + $0x120] ss:$24 sps:$4 sm:$0xff]   ;;  %1916 = vmatprep.subr.bf16.mxu1 %v3507_v2  ;;  %v3513_v6 = vld [vmem:[#allocation2 + $0x424] ss:$24 sps:$4 sm:$0xff]   ;;  %v3516_v8 = vld [vmem:[#allocation2 + $0xf4] ss:$24 sps:$4 sm:$0xff]  }
  0x36   :  { %1917 = vmatpush1.bf16.msra.mxu1 %v3509_v3  ;;  %1875 = vmatprep.subr.bf16.mxu0 %v3510_v4  ;;  %v3515_v7 = vld [vmem:[#allocation2 + $0x420] ss:$24 sps:$4 sm:$0xff]   ;;  %v3518_v9 = vld [vmem:[#allocation2 + $0xf0] ss:$24 sps:$4 sm:$0xff]   ;;  %v3519_v10 = vld [vmem:[#allocation2 + $0x3f4] ss:$24 sps:$4 sm:$0xff]  }
  0x37   :  { %1918 = vmatprep.subr.bf16.mxu1 %v3513_v6  ;;  %v3522_v11 = vld [vmem:[#allocation2 + $0xc4] ss:$24 sps:$4 sm:$0xff]   ;;  %v3521_v12 = vld [vmem:[#allocation2 + $0x3f0] ss:$24 sps:$4 sm:$0xff]   ;;  %v3524_v14 = vld [vmem:[#allocation2 + $0xc0] ss:$24 sps:$4 sm:$0xff]  }
  0x38   :  { %v3525_v13 = vld [vmem:[#allocation2 + $0x3c4] ss:$24 sps:$4 sm:$0xff]   ;;  %v3528_v15 = vld [vmem:[#allocation2 + $0x94] ss:$24 sps:$4 sm:$0xff]   ;;  %v3527_v16 = vld [vmem:[#allocation2 + $0x3c0] ss:$24 sps:$4 sm:$0xff]  }
  0x39   :  { %1876 = vmatpush1.bf16.msra.mxu0 %v3512_v5  ;;  %v3531_v17 = vld [vmem:[#allocation2 + $0x394] ss:$24 sps:$4 sm:$0xff]   ;;  %v3530_v18 = vld [vmem:[#allocation2 + $0x90] ss:$24 sps:$4 sm:$0xff]   ;;  %v3534_v19 = vld [vmem:[#allocation2 + $0x64] ss:$24 sps:$4 sm:$0xff]  }
  0x3a   :  { %1877 = vmatprep.subr.bf16.mxu0 %v3516_v8  ;;  %1919 = vmatpush1.bf16.msra.mxu1 %v3515_v7  ;;  %v3533_v20 = vld [vmem:[#allocation2 + $0x390] ss:$24 sps:$4 sm:$0xff]   ;;  %v3537_v21 = vld [vmem:[#allocation2 + $0x364] ss:$24 sps:$4 sm:$0xff]   ;;  %v3536_v22 = vld [vmem:[#allocation2 + $0x60] ss:$24 sps:$4 sm:$0xff]  }
  0x3b   :  { %1920 = vmatprep.subr.bf16.mxu1 %v3519_v10  ;;  %v3540_v23 = vld [vmem:[#allocation2 + $0x34] ss:$24 sps:$4 sm:$0xff]   ;;  %v3539_v24 = vld [vmem:[#allocation2 + $0x360] ss:$24 sps:$4 sm:$0xff]   ;;  %v3542_v26 = vld [vmem:[#allocation2 + $0x30] ss:$24 sps:$4 sm:$0xff]  }
  0x3c   :  { %v3543_v25 = vld [vmem:[#allocation2 + $0x334] ss:$24 sps:$4 sm:$0xff]   ;;  %v3546_v27 = vld [vmem:[#allocation2 + $0x4] ss:$24 sps:$4 sm:$0xff]   ;;  %v3545_v28 = vld [vmem:[#allocation2 + $0x330] ss:$24 sps:$4 sm:$0xff]  }
  0x3d   :  { %1878 = vmatpush1.bf16.msra.mxu0 %v3518_v9  ;;  %v3549_v29 = vld [vmem:[#allocation2 + $0x304] ss:$24 sps:$4 sm:$0xff]   ;;  %v3548_v30 = vld [vmem:[#allocation2] ss:$24 sps:$4 sm:$0xff]   ;;  %v3552_v31 = vld [vmem:[#allocation2 + $0x2d4] ss:$24 sps:$4 sm:$0xff]  }
  0x3e   :  { %1879 = vmatprep.subr.bf16.mxu0 %v3522_v11  ;;  %1921 = vmatpush1.bf16.msra.mxu1 %v3521_v12  ;;  %v3551_v32 = vld [vmem:[#allocation2 + $0x300] ss:$24 sps:$4 sm:$0xff]   ;;  %v3555_v33 = vld [vmem:[#allocation2 + $0x5d4] ss:$24 sps:$4 sm:$0xff]   ;;  %v3554_v34 = vld [vmem:[#allocation2 + $0x2d0] ss:$24 sps:$4 sm:$0xff]  }
  0x3f   :  { %1922 = vmatprep.subr.bf16.mxu1 %v3525_v13  ;;  %v3558_v35 = vld [vmem:[#allocation2 + $0x2a4] ss:$24 sps:$4 sm:$0xff]   ;;  %v3557_v36 = vld [vmem:[#allocation2 + $0x5d0] ss:$24 sps:$4 sm:$0xff]   ;;  %v3560_v38 = vld [vmem:[#allocation2 + $0x2a0] ss:$24 sps:$4 sm:$0xff]  }
  0x40   :  { %v3561_v37 = vld [vmem:[#allocation2 + $0x5a4] ss:$24 sps:$4 sm:$0xff]   ;;  %v3564_v39 = vld [vmem:[#allocation2 + $0x274] ss:$24 sps:$4 sm:$0xff]   ;;  %v3563_v40 = vld [vmem:[#allocation2 + $0x5a0] ss:$24 sps:$4 sm:$0xff]  }
  0x41   :  { %1880 = vmatpush1.bf16.msra.mxu0 %v3524_v14  ;;  %v3567_v41 = vld [vmem:[#allocation2 + $0x574] ss:$24 sps:$4 sm:$0xff]   ;;  %v3566_v42 = vld [vmem:[#allocation2 + $0x270] ss:$24 sps:$4 sm:$0xff]   ;;  %v3570_v43 = vld [vmem:[#allocation2 + $0x244] ss:$24 sps:$4 sm:$0xff]  }
  0x42   :  { %1881 = vmatprep.subr.bf16.mxu0 %v3528_v15  ;;  %1923 = vmatpush1.bf16.msra.mxu1 %v3527_v16  ;;  %v3569_v44 = vld [vmem:[#allocation2 + $0x570] ss:$24 sps:$4 sm:$0xff]   ;;  %v3573_v45 = vld [vmem:[#allocation2 + $0x544] ss:$24 sps:$4 sm:$0xff]   ;;  %v3572_v46 = vld [vmem:[#allocation2 + $0x240] ss:$24 sps:$4 sm:$0xff]  }
  0x43   :  { %1924 = vmatprep.subr.bf16.mxu1 %v3531_v17  ;;  %v3599_v47 = vld [vmem:[%s4418_s0 + $0x4] ss:$24 sps:$4 sm:$0xff]   ;;  %v3576_v48 = vld [vmem:[#allocation2 + $0x214] ss:$24 sps:$4 sm:$0xff]   ;;  %v3575_v49 = vld [vmem:[#allocation2 + $0x540] ss:$24 sps:$4 sm:$0xff]  }
  0x44   :  { %1905 = vmatprep.mubr.bf16.mxu0 %v3599_v47  ;;  %v3579_v50 = vld [vmem:[#allocation2 + $0x514] ss:$24 sps:$4 sm:$0xff]   ;;  %v3578_v52 = vld [vmem:[#allocation2 + $0x210] ss:$24 sps:$4 sm:$0xff]   ;;  %v3582_v53 = vld [vmem:[#allocation2 + $0x1e4] ss:$24 sps:$4 sm:$0xff]  }
  0x45   :  { %1882 = vmatpush1.bf16.msra.mxu0 %v3530_v18  ;;  %v4284_v51 = vld [vmem:[%s4418_s0 + $0xc] ss:$24 sps:$4 sm:$0xff]   ;;  %v3581_v54 = vld [vmem:[#allocation2 + $0x510] ss:$24 sps:$4 sm:$0xff]   ;;  %v3584_v56 = vld [vmem:[#allocation2 + $0x1e0] ss:$24 sps:$4 sm:$0xff]  }
  0x46   :  { %1883 = vmatprep.subr.bf16.mxu0 %v3534_v19  ;;  %1925 = vmatpush1.bf16.msra.mxu1 %v3533_v20  ;;  %v3585_v55 = vld [vmem:[#allocation2 + $0x4e4] ss:$24 sps:$4 sm:$0xff]   ;;  %v3588_v57 = vld [vmem:[#allocation2 + $0x1b4] ss:$24 sps:$4 sm:$0xff]   ;;  %v3587_v58 = vld [vmem:[#allocation2 + $0x4e0] ss:$24 sps:$4 sm:$0xff]  }
  0x47   :  { %1926 = vmatprep.subr.bf16.mxu1 %v3537_v21  ;;  %1948 = vmatprep.mubr.bf16.mxu1 %v4284_v51  ;;  %v3591_v59 = vld [vmem:[#allocation2 + $0x4b4] ss:$24 sps:$4 sm:$0xff]   ;;  %v3590_v60 = vld [vmem:[#allocation2 + $0x1b0] ss:$24 sps:$4 sm:$0xff]   ;;  %v3594_v61 = vld [vmem:[#allocation2 + $0x184] ss:$24 sps:$4 sm:$0xff]  }
  0x48   :  { %v3593_v62 = vld [vmem:[#allocation2 + $0x4b0] ss:$24 sps:$4 sm:$0xff]   ;;  %v3597_v63 = vld [vmem:[#allocation2 + $0x484] ss:$24 sps:$4 sm:$0xff]   ;;  %v3596_v0 = vld [vmem:[#allocation2 + $0x180] ss:$24 sps:$4 sm:$0xff]  }
  0x49   :  { %1884 = vmatpush1.bf16.msra.mxu0 %v3536_v22  ;;  %v3605_v1 = vld [vmem:[#allocation2 + $0x754] ss:$24 sps:$4 sm:$0xff]   ;;  %v3601_v2 = vld [vmem:[#allocation2 + $0x480] ss:$24 sps:$4 sm:$0xff]   ;;  %v3603_v5 = vld [vmem:[#allocation2 + $0x750] ss:$24 sps:$4 sm:$0xff]  }
  0x4a   :  { %1885 = vmatprep.subr.bf16.mxu0 %v3540_v23  ;;  %1927 = vmatpush1.bf16.msra.mxu1 %v3539_v24  ;;  %v4290_v3 = vld [vmem:[%s4418_s0] ss:$24 sps:$4 sm:$0xff]   ;;  %v3611_v4 = vld [vmem:[#allocation2 + $0x15c] ss:$24 sps:$4 sm:$0xff]   ;;  %v3617_v9 = vld [vmem:[#allocation2 + $0x12c] ss:$24 sps:$4 sm:$0xff]  }
  0x4b   :  { %1928 = vmatprep.subr.bf16.mxu1 %v3543_v25  ;;  %v4295_v6 = vld [vmem:[%s4418_s0 + $0x8] ss:$24 sps:$4 sm:$0xff]   ;;  %v3614_v7 = vld [vmem:[#allocation2 + $0x724] ss:$24 sps:$4 sm:$0xff]   ;;  %v3609_v8 = vld [vmem:[#allocation2 + $0x158] ss:$24 sps:$4 sm:$0xff]  }
  0x4c   :  { %v3612_v10 = vld [vmem:[#allocation2 + $0x720] ss:$24 sps:$4 sm:$0xff]   ;;  %v3620_v11 = vld [vmem:[#allocation2 + $0x6f4] ss:$24 sps:$4 sm:$0xff]   ;;  %v3618_v14 = vld [vmem:[#allocation2 + $0x6f0] ss:$24 sps:$4 sm:$0xff]  }
  0x4d   :  { %1886 = vmatpush1.bf16.msra.mxu0 %v3542_v26  ;;  %v3615_v12 = vld [vmem:[#allocation2 + $0x128] ss:$24 sps:$4 sm:$0xff]   ;;  %v3623_v13 = vld [vmem:[#allocation2 + $0xfc] ss:$24 sps:$4 sm:$0xff]   ;;  %v3621_v16 = vld [vmem:[#allocation2 + $0xf8] ss:$24 sps:$4 sm:$0xff]  }
  0x4e   :  { %1887 = vmatprep.subr.bf16.mxu0 %v3546_v27  ;;  %1929 = vmatpush1.bf16.msra.mxu1 %v3545_v28  ;;  %v3626_v15 = vld [vmem:[#allocation2 + $0x6c4] ss:$24 sps:$4 sm:$0xff]   ;;  %v3624_v18 = vld [vmem:[#allocation2 + $0x6c0] ss:$24 sps:$4 sm:$0xff]   ;;  %v3632_v19 = vld [vmem:[#allocation2 + $0x694] ss:$24 sps:$4 sm:$0xff]  }
  0x4f   :  { %1930 = vmatprep.subr.bf16.mxu1 %v3549_v29  ;;  %v3629_v17 = vld [vmem:[#allocation2 + $0xcc] ss:$24 sps:$4 sm:$0xff]   ;;  %v3627_v20 = vld [vmem:[#allocation2 + $0xc8] ss:$24 sps:$4 sm:$0xff]   ;;  %v3635_v21 = vld [vmem:[#allocation2 + $0x9c] ss:$24 sps:$4 sm:$0xff]  }
  0x50   :  { %v3630_v22 = vld [vmem:[#allocation2 + $0x690] ss:$24 sps:$4 sm:$0xff]   ;;  %v3638_v23 = vld [vmem:[#allocation2 + $0x664] ss:$24 sps:$4 sm:$0xff]   ;;  %v3636_v26 = vld [vmem:[#allocation2 + $0x660] ss:$24 sps:$4 sm:$0xff]  }
  0x51   :  { %1888 = vmatpush1.bf16.msra.mxu0 %v3548_v30  ;;  %v3633_v24 = vld [vmem:[#allocation2 + $0x98] ss:$24 sps:$4 sm:$0xff]   ;;  %v3641_v25 = vld [vmem:[#allocation2 + $0x6c] ss:$24 sps:$4 sm:$0xff]   ;;  %v3639_v28 = vld [vmem:[#allocation2 + $0x68] ss:$24 sps:$4 sm:$0xff]  }
  0x52   :  { %1889 = vmatprep.subr.bf16.mxu0 %v3552_v31  ;;  %1931 = vmatpush1.bf16.msra.mxu1 %v3551_v32  ;;  %v3644_v27 = vld [vmem:[#allocation2 + $0x634] ss:$24 sps:$4 sm:$0xff]   ;;  %v3642_v30 = vld [vmem:[#allocation2 + $0x630] ss:$24 sps:$4 sm:$0xff]   ;;  %v3650_v32 = vld [vmem:[#allocation2 + $0x604] ss:$24 sps:$4 sm:$0xff]  }
  0x53   :  { %1932 = vmatprep.subr.bf16.mxu1 %v3555_v33  ;;  %v3647_v29 = vld [vmem:[#allocation2 + $0x3c] ss:$24 sps:$4 sm:$0xff]   ;;  %v3645_v31 = vld [vmem:[#allocation2 + $0x38] ss:$24 sps:$4 sm:$0xff]   ;;  %vm3085_vm3 = vcmask 7168  }
  0x54   :  { %v4302_v33 = vld [vmem:[%s4418_s0 + $0x14] ss:$24 sps:$4 sm:$0xff]  }
  0x55   :  { %1890 = vmatpush2.bf16.msra.mxu0 %v3554_v34  ;;  %v3653_v34 = vld [vmem:[#allocation2 + $0xc] ss:$24 sps:$4 sm:$0xff]  }
  0x56   :  { %1891 = vmatprep.subr.bf16.mxu0 %v3558_v35  ;;  %1933 = vmatpush2.bf16.msra.mxu1 %v3557_v36  ;;  %v3648_v35 = vld [vmem:[#allocation2 + $0x600] ss:$24 sps:$4 sm:$0xff]   ;;  %v3656_v36 = vld [vmem:[#allocation2 + $0x8d4] ss:$24 sps:$4 sm:$0xff]  }
  0x57   :  { %1934 = vmatprep.subr.bf16.mxu1 %v3561_v37  ;;  %v3651_v37 = vld [vmem:[#allocation2 + $0x8] ss:$24 sps:$4 sm:$0xff]  }
  0x59   :  { %1892 = vmatpush2.bf16.msra.mxu0 %v3560_v38  ;;  %v3659_v38 = vld [vmem:[#allocation2 + $0x2dc] ss:$24 sps:$4 sm:$0xff]  }
  0x5a   :  { %1893 = vmatprep.subr.bf16.mxu0 %v3564_v39  ;;  %1935 = vmatpush2.bf16.msra.mxu1 %v3563_v40  ;;  %v3654_v39 = vld [vmem:[#allocation2 + $0x8d0] ss:$24 sps:$4 sm:$0xff]   ;;  %v3662_v40 = vld [vmem:[#allocation2 + $0x8a4] ss:$24 sps:$4 sm:$0xff]  }
  0x5b   :  { %1936 = vmatprep.subr.bf16.mxu1 %v3567_v41  ;;  %v3657_v41 = vld [vmem:[#allocation2 + $0x2d8] ss:$24 sps:$4 sm:$0xff]  }
  0x5d   :  { %1894 = vmatpush2.bf16.msra.mxu0 %v3566_v42  ;;  %v3665_v42 = vld [vmem:[#allocation2 + $0x2ac] ss:$24 sps:$4 sm:$0xff]  }
  0x5e   :  { %1895 = vmatprep.subr.bf16.mxu0 %v3570_v43  ;;  %1937 = vmatpush2.bf16.msra.mxu1 %v3569_v44  ;;  %v3660_v43 = vld [vmem:[#allocation2 + $0x8a0] ss:$24 sps:$4 sm:$0xff]   ;;  %v3668_v44 = vld [vmem:[#allocation2 + $0x874] ss:$24 sps:$4 sm:$0xff]  }
  0x5f   :  { %1938 = vmatprep.subr.bf16.mxu1 %v3573_v45  ;;  %v3663_v45 = vld [vmem:[#allocation2 + $0x2a8] ss:$24 sps:$4 sm:$0xff]  }
  0x61   :  { %1896 = vmatpush2.bf16.msra.mxu0 %v3572_v46  ;;  %v3671_v46 = vld [vmem:[#allocation2 + $0x27c] ss:$24 sps:$4 sm:$0xff]  }
  0x62   :  { %1897 = vmatprep.subr.bf16.mxu0 %v3576_v48  ;;  %1939 = vmatpush2.bf16.msra.mxu1 %v3575_v49  ;;  %v3674_v48 = vld [vmem:[#allocation2 + $0x844] ss:$24 sps:$4 sm:$0xff]   ;;  %v3669_v49 = vld [vmem:[#allocation2 + $0x278] ss:$24 sps:$4 sm:$0xff]  }
  0x63   :  { %1940 = vmatprep.subr.bf16.mxu1 %v3579_v50  ;;  %v3677_v50 = vld [vmem:[#allocation2 + $0x24c] ss:$24 sps:$4 sm:$0xff]  }
  0x65   :  { %1898 = vmatpush2.bf16.msra.mxu0 %v3578_v52  ;;  %v3672_v52 = vld [vmem:[#allocation2 + $0x840] ss:$24 sps:$4 sm:$0xff]  }
  0x66   :  { %1899 = vmatprep.subr.bf16.mxu0 %v3582_v53  ;;  %1941 = vmatpush2.bf16.msra.mxu1 %v3581_v54  ;;  %v3680_v53 = vld [vmem:[#allocation2 + $0x814] ss:$24 sps:$4 sm:$0xff]   ;;  %v3675_v54 = vld [vmem:[#allocation2 + $0x248] ss:$24 sps:$4 sm:$0xff]  }
  0x67   :  { %1942 = vmatprep.subr.bf16.mxu1 %v3585_v55  ;;  %v3683_v55 = vld [vmem:[#allocation2 + $0x21c] ss:$24 sps:$4 sm:$0xff]  }
  0x69   :  { %1900 = vmatpush2.bf16.msra.mxu0 %v3584_v56  ;;  %v3678_v56 = vld [vmem:[#allocation2 + $0x810] ss:$24 sps:$4 sm:$0xff]  }
  0x6a   :  { %1901 = vmatprep.subr.bf16.mxu0 %v3588_v57  ;;  %1943 = vmatpush2.bf16.msra.mxu1 %v3587_v58  ;;  %v3686_v57 = vld [vmem:[#allocation2 + $0x7e4] ss:$24 sps:$4 sm:$0xff]   ;;  %v3681_v58 = vld [vmem:[#allocation2 + $0x218] ss:$24 sps:$4 sm:$0xff]  }
  0x6b   :  { %1944 = vmatprep.subr.bf16.mxu1 %v3591_v59  ;;  %v3689_v59 = vld [vmem:[#allocation2 + $0x1ec] ss:$24 sps:$4 sm:$0xff]  }
  0x6d   :  { %1902 = vmatpush2.bf16.msra.mxu0 %v3590_v60  ;;  %v3684_v60 = vld [vmem:[#allocation2 + $0x7e0] ss:$24 sps:$4 sm:$0xff]  }
  0x6e   :  { %1903 = vmatprep.subr.bf16.mxu0 %v3594_v61  ;;  %1945 = vmatpush2.bf16.msra.mxu1 %v3593_v62  ;;  %v3692_v61 = vld [vmem:[#allocation2 + $0x7b4] ss:$24 sps:$4 sm:$0xff]   ;;  %v3687_v62 = vld [vmem:[#allocation2 + $0x1e8] ss:$24 sps:$4 sm:$0xff]  }
  0x6f   :  { %1946 = vmatprep.subr.bf16.mxu1 %v3597_v63  ;;  %v3695_v63 = vld [vmem:[#allocation2 + $0x1bc] ss:$24 sps:$4 sm:$0xff]  }
  0x71   :  { %1904 = vmatpush2.bf16.msra.mxu0 %v3596_v0  ;;  %v3690_v0 = vld [vmem:[#allocation2 + $0x7b0] ss:$24 sps:$4 sm:$0xff]  }
  0x72   :  { %1959 = vmatprep.subr.bf16.mxu0 %v3605_v1  ;;  %1947 = vmatpush2.bf16.msra.mxu1 %v3601_v2  ;;  %v3698_v1 = vld [vmem:[#allocation2 + $0x784] ss:$24 sps:$4 sm:$0xff]   ;;  %v3693_v2 = vld [vmem:[#allocation2 + $0x1b8] ss:$24 sps:$4 sm:$0xff]  }
  0x73   :  { %2002 = vmatprep.subr.bf16.mxu1 %v3611_v4  ;;  %v3701_v4 = vld [vmem:[#allocation2 + $0x18c] ss:$24 sps:$4 sm:$0xff]  }
  0x74   :  { %1906 = vmatmul.mubr.bf16.vlgmr.msra.gmra.mxu0 %v4290_v3 }
  0x75   :  { %1960 = vmatpush1.bf16.msra.mxu0 %v3603_v5  ;;  %1949 = vmatmul.mubr.bf16.vlgmr.msra.gmra.mxu1 %v4295_v6  ;;  %v3696_v5 = vld [vmem:[#allocation2 + $0x780] ss:$24 sps:$4 sm:$0xff]  }
  0x76   :  { %1961 = vmatprep.subr.bf16.mxu0 %v3614_v7  ;;  %2003 = vmatpush1.bf16.msra.mxu1 %v3609_v8  ;;  %v3707_v7 = vld [vmem:[#allocation2 + $0x45c] ss:$24 sps:$4 sm:$0xff]   ;;  %v3699_v8 = vld [vmem:[#allocation2 + $0x188] ss:$24 sps:$4 sm:$0xff]  }
  0x77   :  { %2034 = vmatprep.mubr.bf16.mxu1 %v3599_v47  ;;  %2004 = vmatprep.subr.bf16.mxu1 %v3617_v9  ;;  %v3666_v47 = vld [vmem:[#allocation2 + $0x870] ss:$24 sps:$4 sm:$0xff]  }
  0x78   :  { %1991 = vmatprep.mubr.bf16.mxu0 %v4302_v33  ;;  %v4308_v9 = vld [vmem:[%s4418_s0 + $0x10] ss:$24 sps:$4 sm:$0xff]  }
  0x79   :  { %1962 = vmatpush1.bf16.msra.mxu0 %v3612_v10  ;;  %v3710_v10 = vld [vmem:[#allocation2 + $0x75c] ss:$24 sps:$4 sm:$0xff]  }
  0x7a   :  { %1963 = vmatprep.subr.bf16.mxu0 %v3620_v11  ;;  %2005 = vmatpush1.bf16.msra.mxu1 %v3615_v12  ;;  %v3705_v11 = vld [vmem:[#allocation2 + $0x458] ss:$24 sps:$4 sm:$0xff]   ;;  %v3713_v12 = vld [vmem:[#allocation2 + $0x42c] ss:$24 sps:$4 sm:$0xff]  }
  0x7b   :  { %2006 = vmatprep.subr.bf16.mxu1 %v3623_v13  ;;  %v3708_v13 = vld [vmem:[#allocation2 + $0x758] ss:$24 sps:$4 sm:$0xff]  }
  0x7d   :  { %1964 = vmatpush1.bf16.msra.mxu0 %v3618_v14  ;;  %v3716_v14 = vld [vmem:[#allocation2 + $0x72c] ss:$24 sps:$4 sm:$0xff]  }
  0x7e   :  { %1965 = vmatprep.subr.bf16.mxu0 %v3626_v15  ;;  %2007 = vmatpush1.bf16.msra.mxu1 %v3621_v16  ;;  %v3711_v15 = vld [vmem:[#allocation2 + $0x428] ss:$24 sps:$4 sm:$0xff]   ;;  %v3719_v16 = vld [vmem:[#allocation2 + $0x3fc] ss:$24 sps:$4 sm:$0xff]  }
  0x7f   :  { %2008 = vmatprep.subr.bf16.mxu1 %v3629_v17  ;;  %v3714_v17 = vld [vmem:[#allocation2 + $0x728] ss:$24 sps:$4 sm:$0xff]  }
  0x81   :  { %1966 = vmatpush1.bf16.msra.mxu0 %v3624_v18  ;;  %v3722_v18 = vld [vmem:[#allocation2 + $0x6fc] ss:$24 sps:$4 sm:$0xff]  }
  0x82   :  { %1967 = vmatprep.subr.bf16.mxu0 %v3632_v19  ;;  %2009 = vmatpush1.bf16.msra.mxu1 %v3627_v20  ;;  %v3717_v19 = vld [vmem:[#allocation2 + $0x3f8] ss:$24 sps:$4 sm:$0xff]   ;;  %v3725_v20 = vld [vmem:[#allocation2 + $0x3cc] ss:$24 sps:$4 sm:$0xff]  }
  0x83   :  { %2010 = vmatprep.subr.bf16.mxu1 %v3635_v21  ;;  %v3720_v21 = vld [vmem:[#allocation2 + $0x6f8] ss:$24 sps:$4 sm:$0xff]  }
  0x85   :  { %1968 = vmatpush1.bf16.msra.mxu0 %v3630_v22  ;;  %v3728_v22 = vld [vmem:[#allocation2 + $0x6cc] ss:$24 sps:$4 sm:$0xff]  }
  0x86   :  { %1969 = vmatprep.subr.bf16.mxu0 %v3638_v23  ;;  %2011 = vmatpush1.bf16.msra.mxu1 %v3633_v24  ;;  %v3726_v23 = vld [vmem:[#allocation2 + $0x6c8] ss:$24 sps:$4 sm:$0xff]   ;;  %v3734_v24 = vld [vmem:[#allocation2 + $0x69c] ss:$24 sps:$4 sm:$0xff]  }
  0x87   :  { %2012 = vmatprep.subr.bf16.mxu1 %v3641_v25  ;;  %v3729_v25 = vld [vmem:[#allocation2 + $0x398] ss:$24 sps:$4 sm:$0xff]  }
  0x89   :  { %1970 = vmatpush1.bf16.msra.mxu0 %v3636_v26  ;;  %v3737_v26 = vld [vmem:[#allocation2 + $0x36c] ss:$24 sps:$4 sm:$0xff]  }
  0x8a   :  { %1971 = vmatprep.subr.bf16.mxu0 %v3644_v27  ;;  %2013 = vmatpush1.bf16.msra.mxu1 %v3639_v28  ;;  %v3732_v27 = vld [vmem:[#allocation2 + $0x698] ss:$24 sps:$4 sm:$0xff]   ;;  %v3740_v28 = vld [vmem:[#allocation2 + $0x66c] ss:$24 sps:$4 sm:$0xff]  }
  0x8b   :  { %2014 = vmatprep.subr.bf16.mxu1 %v3647_v29  ;;  %v3735_v29 = vld [vmem:[#allocation2 + $0x368] ss:$24 sps:$4 sm:$0xff]  }
  0x8d   :  { %1972 = vmatpush1.bf16.msra.mxu0 %v3642_v30  ;;  %v3743_v30 = vld [vmem:[#allocation2 + $0x33c] ss:$24 sps:$4 sm:$0xff]  }
  0x8e   :  { %1973 = vmatprep.subr.bf16.mxu0 %v3650_v32  ;;  %2015 = vmatpush1.bf16.msra.mxu1 %v3645_v31  ;;  %v3738_v31 = vld [vmem:[#allocation2 + $0x668] ss:$24 sps:$4 sm:$0xff]   ;;  %v3746_v32 = vld [vmem:[#allocation2 + $0x63c] ss:$24 sps:$4 sm:$0xff]  }
  0x8f   :  { %2016 = vmatprep.subr.bf16.mxu1 %v3653_v34  ;;  %v3749_v34 = vld [vmem:[#allocation2 + $0x30c] ss:$24 sps:$4 sm:$0xff]  }
  0x91   :  { %1974 = vmatpush1.bf16.msra.mxu0 %v3648_v35  ;;  %v3744_v35 = vld [vmem:[#allocation2 + $0x638] ss:$24 sps:$4 sm:$0xff]  }
  0x92   :  { %1975 = vmatprep.subr.bf16.mxu0 %v3656_v36  ;;  %2017 = vmatpush1.bf16.msra.mxu1 %v3651_v37  ;;  %v3752_v36 = vld [vmem:[#allocation2 + $0x60c] ss:$24 sps:$4 sm:$0xff]   ;;  %v3747_v37 = vld [vmem:[#allocation2 + $0x308] ss:$24 sps:$4 sm:$0xff]  }
  0x93   :  { %2018 = vmatprep.subr.bf16.mxu1 %v3659_v38  ;;  %v3755_v38 = vld [vmem:[#allocation2 + $0x5dc] ss:$24 sps:$4 sm:$0xff]  }
  0x95   :  { %1976 = vmatpush2.bf16.msra.mxu0 %v3654_v39  ;;  %v3750_v39 = vld [vmem:[#allocation2 + $0x608] ss:$24 sps:$4 sm:$0xff]  }
  0x96   :  { %1977 = vmatprep.subr.bf16.mxu0 %v3662_v40  ;;  %2019 = vmatpush2.bf16.msra.mxu1 %v3657_v41  ;;  %v3758_v40 = vld [vmem:[#allocation2 + $0x8dc] ss:$24 sps:$4 sm:$0xff]   ;;  %v3753_v41 = vld [vmem:[#allocation2 + $0x5d8] ss:$24 sps:$4 sm:$0xff]  }
  0x97   :  { %2020 = vmatprep.subr.bf16.mxu1 %v3665_v42  ;;  %v3761_v42 = vld [vmem:[#allocation2 + $0x5ac] ss:$24 sps:$4 sm:$0xff]  }
  0x99   :  { %1978 = vmatpush2.bf16.msra.mxu0 %v3660_v43  ;;  %v3756_v43 = vld [vmem:[#allocation2 + $0x8d8] ss:$24 sps:$4 sm:$0xff]  }
  0x9a   :  { %1979 = vmatprep.subr.bf16.mxu0 %v3668_v44  ;;  %2021 = vmatpush2.bf16.msra.mxu1 %v3663_v45  ;;  %v3764_v44 = vld [vmem:[#allocation2 + $0x8ac] ss:$24 sps:$4 sm:$0xff]   ;;  %v3759_v45 = vld [vmem:[#allocation2 + $0x5a8] ss:$24 sps:$4 sm:$0xff]  }
  0x9b   :  { %2022 = vmatprep.subr.bf16.mxu1 %v3671_v46  ;;  %v3767_v46 = vld [vmem:[#allocation2 + $0x57c] ss:$24 sps:$4 sm:$0xff]  }
  0x9d   :  { %1980 = vmatpush2.bf16.msra.mxu0 %v3666_v47  ;;  %v3762_v47 = vld [vmem:[#allocation2 + $0x8a8] ss:$24 sps:$4 sm:$0xff]  }
  0x9e   :  { %1981 = vmatprep.subr.bf16.mxu0 %v3674_v48  ;;  %2023 = vmatpush2.bf16.msra.mxu1 %v3669_v49  ;;  %v3770_v48 = vld [vmem:[#allocation2 + $0x87c] ss:$24 sps:$4 sm:$0xff]   ;;  %v3765_v49 = vld [vmem:[#allocation2 + $0x578] ss:$24 sps:$4 sm:$0xff]  }
  0x9f   :  { %2024 = vmatprep.subr.bf16.mxu1 %v3677_v50  ;;  %v3773_v50 = vld [vmem:[#allocation2 + $0x54c] ss:$24 sps:$4 sm:$0xff]  }
  0xa1   :  { %1982 = vmatpush2.bf16.msra.mxu0 %v3672_v52  ;;  %v3768_v52 = vld [vmem:[#allocation2 + $0x878] ss:$24 sps:$4 sm:$0xff]  }
  0xa2   :  { %1983 = vmatprep.subr.bf16.mxu0 %v3680_v53  ;;  %2025 = vmatpush2.bf16.msra.mxu1 %v3675_v54  ;;  %v3776_v53 = vld [vmem:[#allocation2 + $0x84c] ss:$24 sps:$4 sm:$0xff]   ;;  %v3771_v54 = vld [vmem:[#allocation2 + $0x548] ss:$24 sps:$4 sm:$0xff]  }
  0xa3   :  { %2026 = vmatprep.subr.bf16.mxu1 %v3683_v55  ;;  %v3779_v55 = vld [vmem:[#allocation2 + $0x51c] ss:$24 sps:$4 sm:$0xff]  }
  0xa5   :  { %1984 = vmatpush2.bf16.msra.mxu0 %v3678_v56  ;;  %v3774_v56 = vld [vmem:[#allocation2 + $0x848] ss:$24 sps:$4 sm:$0xff]  }
  0xa6   :  { %1985 = vmatprep.subr.bf16.mxu0 %v3686_v57  ;;  %2027 = vmatpush2.bf16.msra.mxu1 %v3681_v58  ;;  %v3782_v57 = vld [vmem:[#allocation2 + $0x81c] ss:$24 sps:$4 sm:$0xff]   ;;  %v3777_v58 = vld [vmem:[#allocation2 + $0x518] ss:$24 sps:$4 sm:$0xff]  }
  0xa7   :  { %2028 = vmatprep.subr.bf16.mxu1 %v3689_v59  ;;  %v3785_v59 = vld [vmem:[#allocation2 + $0x4ec] ss:$24 sps:$4 sm:$0xff]  }
  0xa9   :  { %1986 = vmatpush2.bf16.msra.mxu0 %v3684_v60  ;;  %v3780_v60 = vld [vmem:[#allocation2 + $0x818] ss:$24 sps:$4 sm:$0xff]  }
  0xaa   :  { %1987 = vmatprep.subr.bf16.mxu0 %v3692_v61  ;;  %2029 = vmatpush2.bf16.msra.mxu1 %v3687_v62  ;;  %v3788_v61 = vld [vmem:[#allocation2 + $0x7ec] ss:$24 sps:$4 sm:$0xff]   ;;  %v3783_v62 = vld [vmem:[#allocation2 + $0x4e8] ss:$24 sps:$4 sm:$0xff]  }
  0xab   :  { %2030 = vmatprep.subr.bf16.mxu1 %v3695_v63  ;;  %v3791_v63 = vld [vmem:[#allocation2 + $0x4bc] ss:$24 sps:$4 sm:$0xff]  }
  0xad   :  { %1988 = vmatpush2.bf16.msra.mxu0 %v3690_v0  ;;  %v3786_v0 = vld [vmem:[#allocation2 + $0x7e8] ss:$24 sps:$4 sm:$0xff]  }
  0xae   :  { %1989 = vmatprep.subr.bf16.mxu0 %v3698_v1  ;;  %2031 = vmatpush2.bf16.msra.mxu1 %v3693_v2  ;;  %v3794_v1 = vld [vmem:[#allocation2 + $0x7bc] ss:$24 sps:$4 sm:$0xff]   ;;  %v3789_v2 = vld [vmem:[#allocation2 + $0x4b8] ss:$24 sps:$4 sm:$0xff]  }
  0xaf   :  { %2032 = vmatprep.subr.bf16.mxu1 %v3701_v4  ;;  %v3797_v4 = vld [vmem:[#allocation2 + $0x48c] ss:$24 sps:$4 sm:$0xff]  }
  0xb1   :  { %1990 = vmatpush2.bf16.msra.mxu0 %v3696_v5  ;;  %v3792_v5 = vld [vmem:[#allocation2 + $0x7b8] ss:$24 sps:$4 sm:$0xff]  }
  0xb2   :  { %2045 = vmatprep.subr.bf16.mxu0 %v3707_v7  ;;  %2033 = vmatpush2.bf16.msra.mxu1 %v3699_v8  ;;  %v3800_v7 = vld [vmem:[#allocation2 + $0x78c] ss:$24 sps:$4 sm:$0xff]   ;;  %v3795_v8 = vld [vmem:[#allocation2 + $0x488] ss:$24 sps:$4 sm:$0xff]  }
  0xb3   :  { %2088 = vmatprep.subr.bf16.mxu1 %v3710_v10  ;;  %v3803_v10 = vld [vmem:[#allocation2 + $0x164] ss:$24 sps:$4 sm:$0xff]  }
  0xb4   :  { %1992 = vmatmul.mubr.bf16.vlgmr.msra.gmra.mxu0 %v4308_v9 }
  0xb5   :  { %2046 = vmatpush1.bf16.msra.mxu0 %v3705_v11  ;;  %2077 = vmatprep.mubr.bf16.mxu0 %v4284_v51  ;;  %v3723_v51 = vld [vmem:[#allocation2 + $0x3c8] ss:$24 sps:$4 sm:$0xff]  }
  0xb6   :  { %2035 = vmatmul.mubr.bf16.vlgmr.msra.gmra.mxu1 %v4290_v3  ;;  %2047 = vmatprep.subr.bf16.mxu0 %v3713_v12  ;;  %v3731_v3 = vld [vmem:[#allocation2 + $0x39c] ss:$24 sps:$4 sm:$0xff]   ;;  %v3798_v11 = vld [vmem:[#allocation2 + $0x788] ss:$24 sps:$4 sm:$0xff]  }
  0xb7   :  { %2089 = vmatpush1.bf16.msra.mxu1 %v3708_v13  ;;  %2120 = vmatprep.mubr.bf16.mxu1 %v4302_v33  ;;  %v3741_v33 = vld [vmem:[#allocation2 + $0x338] ss:$24 sps:$4 sm:$0xff]   ;;  %v3806_v12 = vld [vmem:[#allocation2 + $0x464] ss:$24 sps:$4 sm:$0xff]  }
  0xb8   :  { %2090 = vmatprep.subr.bf16.mxu1 %v3716_v14  ;;  %v3801_v13 = vld [vmem:[#allocation2 + $0x160] ss:$24 sps:$4 sm:$0xff]   ;;  %v3809_v14 = vld [vmem:[#allocation2 + $0x134] ss:$24 sps:$4 sm:$0xff]  }
  0xb9   :  { %2048 = vmatpush1.bf16.msra.mxu0 %v3711_v15  ;;  %v3804_v15 = vld [vmem:[#allocation2 + $0x460] ss:$24 sps:$4 sm:$0xff]  }
  0xba   :  { %2049 = vmatprep.subr.bf16.mxu0 %v3719_v16  ;;  %v3812_v16 = vld [vmem:[#allocation2 + $0x434] ss:$24 sps:$4 sm:$0xff]  }
  0xbb   :  { %2091 = vmatpush1.bf16.msra.mxu1 %v3714_v17  ;;  %v3807_v17 = vld [vmem:[#allocation2 + $0x130] ss:$24 sps:$4 sm:$0xff]  }
  0xbc   :  { %2092 = vmatprep.subr.bf16.mxu1 %v3722_v18  ;;  %v4119_v18 = vld [vmem:[%s4418_s0 + $0x4] ss:$24 sps:$4 sm:$0xff]  }
  0xbd   :  { %2050 = vmatpush1.bf16.msra.mxu0 %v3717_v19  ;;  %v3815_v19 = vld [vmem:[#allocation2 + $0x104] ss:$24 sps:$4 sm:$0xff]  }
  0xbe   :  { %2051 = vmatprep.subr.bf16.mxu0 %v3725_v20  ;;  %v3810_v20 = vld [vmem:[#allocation2 + $0x430] ss:$24 sps:$4 sm:$0xff]  }
  0xbf   :  { %2093 = vmatpush1.bf16.msra.mxu1 %v3720_v21  ;;  %v4120_v21 = vld [vmem:[%s4418_s0 + $0xc] ss:$24 sps:$4 sm:$0xff]  }
  0xc0   :  { %2094 = vmatprep.subr.bf16.mxu1 %v3728_v22  ;;  %v3813_v22 = vld [vmem:[#allocation2 + $0x100] ss:$24 sps:$4 sm:$0xff]  }
  0xc1   :  { %2052 = vmatpush1.bf16.msra.mxu0 %v3723_v51  ;;  %v3821_v51 = vld [vmem:[#allocation2 + $0xd4] ss:$24 sps:$4 sm:$0xff]  }
  0xc2   :  { %2053 = vmatprep.subr.bf16.mxu0 %v3731_v3  ;;  %v3816_v3 = vld [vmem:[#allocation2 + $0x400] ss:$24 sps:$4 sm:$0xff]  }
  0xc3   :  { %2095 = vmatpush1.bf16.msra.mxu1 %v3726_v23  ;;  %v3824_v23 = vld [vmem:[#allocation2 + $0x3d4] ss:$24 sps:$4 sm:$0xff]  }
  0xc4   :  { %2096 = vmatprep.subr.bf16.mxu1 %v3734_v24  ;;  %v3827_v24 = vld [vmem:[#allocation2 + $0xa4] ss:$24 sps:$4 sm:$0xff]  }
  0xc5   :  { %2054 = vmatpush1.bf16.msra.mxu0 %v3729_v25  ;;  %v3822_v25 = vld [vmem:[#allocation2 + $0x3d0] ss:$24 sps:$4 sm:$0xff]  }
  0xc6   :  { %2055 = vmatprep.subr.bf16.mxu0 %v3737_v26  ;;  %v3830_v26 = vld [vmem:[#allocation2 + $0x3a4] ss:$24 sps:$4 sm:$0xff]  }
  0xc7   :  { %2097 = vmatpush1.bf16.msra.mxu1 %v3732_v27  ;;  %v3825_v27 = vld [vmem:[#allocation2 + $0xa0] ss:$24 sps:$4 sm:$0xff]  }
  0xc8   :  { %2098 = vmatprep.subr.bf16.mxu1 %v3740_v28  ;;  %v3833_v28 = vld [vmem:[#allocation2 + $0x74] ss:$24 sps:$4 sm:$0xff]  }
  0xc9   :  { %2056 = vmatpush1.bf16.msra.mxu0 %v3735_v29  ;;  %v3828_v29 = vld [vmem:[#allocation2 + $0x3a0] ss:$24 sps:$4 sm:$0xff]  }
  0xca   :  { %2057 = vmatprep.subr.bf16.mxu0 %v3743_v30  ;;  %v3836_v30 = vld [vmem:[#allocation2 + $0x374] ss:$24 sps:$4 sm:$0xff]  }
  0xcb   :  { %2099 = vmatpush1.bf16.msra.mxu1 %v3738_v31  ;;  %v3831_v31 = vld [vmem:[#allocation2 + $0x70] ss:$24 sps:$4 sm:$0xff]  }
  0xcc   :  { %2100 = vmatprep.subr.bf16.mxu1 %v3746_v32  ;;  %v3839_v32 = vld [vmem:[#allocation2 + $0x44] ss:$24 sps:$4 sm:$0xff]  }
  0xcd   :  { %2058 = vmatpush1.bf16.msra.mxu0 %v3741_v33  ;;  %v3834_v33 = vld [vmem:[#allocation2 + $0x370] ss:$24 sps:$4 sm:$0xff]  }
  0xce   :  { %2059 = vmatprep.subr.bf16.mxu0 %v3749_v34  ;;  %v3837_v34 = vld [vmem:[#allocation2 + $0x40] ss:$24 sps:$4 sm:$0xff]  }
  0xcf   :  { %2101 = vmatpush1.bf16.msra.mxu1 %v3744_v35  ;;  %v3842_v35 = vld [vmem:[#allocation2 + $0x344] ss:$24 sps:$4 sm:$0xff]  }
  0xd0   :  { %2102 = vmatprep.subr.bf16.mxu1 %v3752_v36  ;;  %v3840_v36 = vld [vmem:[#allocation2 + $0x340] ss:$24 sps:$4 sm:$0xff]  }
  0xd1   :  { %2060 = vmatpush1.bf16.msra.mxu0 %v3747_v37  ;;  %v3845_v37 = vld [vmem:[#allocation2 + $0x14] ss:$24 sps:$4 sm:$0xff]  }
  0xd2   :  { %2061 = vmatprep.subr.bf16.mxu0 %v3755_v38  ;;  %v3843_v38 = vld [vmem:[#allocation2 + $0x10] ss:$24 sps:$4 sm:$0xff]  }
  0xd3   :  { %2103 = vmatpush1.bf16.msra.mxu1 %v3750_v39  ;;  %v3848_v39 = vld [vmem:[#allocation2 + $0x314] ss:$24 sps:$4 sm:$0xff]  }
  0xd4   :  { %2104 = vmatprep.subr.bf16.mxu1 %v3758_v40  ;;  %v3851_v40 = vld [vmem:[#allocation2 + $0x2e4] ss:$24 sps:$4 sm:$0xff]  }
  0xd5   :  { %2062 = vmatpush2.bf16.msra.mxu0 %v3753_v41  ;;  %v3846_v41 = vld [vmem:[#allocation2 + $0x310] ss:$24 sps:$4 sm:$0xff]  }
  0xd6   :  { %2063 = vmatprep.subr.bf16.mxu0 %v3761_v42  ;;  %v3854_v42 = vld [vmem:[#allocation2 + $0x5e4] ss:$24 sps:$4 sm:$0xff]  }
  0xd7   :  { %2105 = vmatpush2.bf16.msra.mxu1 %v3756_v43  ;;  %v3849_v43 = vld [vmem:[#allocation2 + $0x2e0] ss:$24 sps:$4 sm:$0xff]  }
  0xd8   :  { %2106 = vmatprep.subr.bf16.mxu1 %v3764_v44  ;;  %v3857_v44 = vld [vmem:[#allocation2 + $0x2b4] ss:$24 sps:$4 sm:$0xff]  }
  0xd9   :  { %2064 = vmatpush2.bf16.msra.mxu0 %v3759_v45  ;;  %v3852_v45 = vld [vmem:[#allocation2 + $0x5e0] ss:$24 sps:$4 sm:$0xff]  }
  0xda   :  { %2065 = vmatprep.subr.bf16.mxu0 %v3767_v46  ;;  %v3855_v46 = vld [vmem:[#allocation2 + $0x2b0] ss:$24 sps:$4 sm:$0xff]  }
  0xdb   :  { %2107 = vmatpush2.bf16.msra.mxu1 %v3762_v47  ;;  %v3860_v47 = vld [vmem:[#allocation2 + $0x5b4] ss:$24 sps:$4 sm:$0xff]  }
  0xdc   :  { %2108 = vmatprep.subr.bf16.mxu1 %v3770_v48  ;;  %v3858_v48 = vld [vmem:[#allocation2 + $0x5b0] ss:$24 sps:$4 sm:$0xff]  }
  0xdd   :  { %2066 = vmatpush2.bf16.msra.mxu0 %v3765_v49  ;;  %v3863_v49 = vld [vmem:[#allocation2 + $0x284] ss:$24 sps:$4 sm:$0xff]  }
  0xde   :  { %2067 = vmatprep.subr.bf16.mxu0 %v3773_v50  ;;  %v3861_v50 = vld [vmem:[#allocation2 + $0x280] ss:$24 sps:$4 sm:$0xff]  }
  0xdf   :  { %2109 = vmatpush2.bf16.msra.mxu1 %v3768_v52  ;;  %v3866_v52 = vld [vmem:[#allocation2 + $0x584] ss:$24 sps:$4 sm:$0xff]  }
  0xe0   :  { %2110 = vmatprep.subr.bf16.mxu1 %v3776_v53  ;;  %v3869_v53 = vld [vmem:[#allocation2 + $0x254] ss:$24 sps:$4 sm:$0xff]  }
  0xe1   :  { %2068 = vmatpush2.bf16.msra.mxu0 %v3771_v54  ;;  %v3864_v54 = vld [vmem:[#allocation2 + $0x580] ss:$24 sps:$4 sm:$0xff]  }
  0xe2   :  { %2069 = vmatprep.subr.bf16.mxu0 %v3779_v55  ;;  %v3872_v55 = vld [vmem:[#allocation2 + $0x554] ss:$24 sps:$4 sm:$0xff]  }
  0xe3   :  { %2111 = vmatpush2.bf16.msra.mxu1 %v3774_v56  ;;  %v3867_v56 = vld [vmem:[#allocation2 + $0x250] ss:$24 sps:$4 sm:$0xff]  }
  0xe4   :  { %2112 = vmatprep.subr.bf16.mxu1 %v3782_v57  ;;  %v3875_v57 = vld [vmem:[#allocation2 + $0x224] ss:$24 sps:$4 sm:$0xff]  }
  0xe5   :  { %2070 = vmatpush2.bf16.msra.mxu0 %v3777_v58  ;;  %v3870_v58 = vld [vmem:[#allocation2 + $0x550] ss:$24 sps:$4 sm:$0xff]  }
  0xe6   :  { %2071 = vmatprep.subr.bf16.mxu0 %v3785_v59  ;;  %v3878_v59 = vld [vmem:[#allocation2 + $0x524] ss:$24 sps:$4 sm:$0xff]  }
  0xe7   :  { %2113 = vmatpush2.bf16.msra.mxu1 %v3780_v60  ;;  %v3873_v60 = vld [vmem:[#allocation2 + $0x220] ss:$24 sps:$4 sm:$0xff]  }
  0xe8   :  { %2114 = vmatprep.subr.bf16.mxu1 %v3788_v61  ;;  %v3881_v61 = vld [vmem:[#allocation2 + $0x1f4] ss:$24 sps:$4 sm:$0xff]  }
  0xe9   :  { %2072 = vmatpush2.bf16.msra.mxu0 %v3783_v62  ;;  %v3876_v62 = vld [vmem:[#allocation2 + $0x520] ss:$24 sps:$4 sm:$0xff]  }
  0xea   :  { %2073 = vmatprep.subr.bf16.mxu0 %v3791_v63  ;;  %v3884_v63 = vld [vmem:[#allocation2 + $0x4f4] ss:$24 sps:$4 sm:$0xff]  }
  0xeb   :  { %2115 = vmatpush2.bf16.msra.mxu1 %v3786_v0  ;;  %v3879_v0 = vld [vmem:[#allocation2 + $0x1f0] ss:$24 sps:$4 sm:$0xff]  }
  0xec   :  { %2116 = vmatprep.subr.bf16.mxu1 %v3794_v1  ;;  %v3887_v1 = vld [vmem:[#allocation2 + $0x1c4] ss:$24 sps:$4 sm:$0xff]  }
  0xed   :  { %2074 = vmatpush2.bf16.msra.mxu0 %v3789_v2  ;;  %v3882_v2 = vld [vmem:[#allocation2 + $0x4f0] ss:$24 sps:$4 sm:$0xff]  }
  0xee   :  { %2075 = vmatprep.subr.bf16.mxu0 %v3797_v4  ;;  %v3890_v4 = vld [vmem:[#allocation2 + $0x4c4] ss:$24 sps:$4 sm:$0xff]  }
  0xef   :  { %2117 = vmatpush2.bf16.msra.mxu1 %v3792_v5  ;;  %v3885_v5 = vld [vmem:[#allocation2 + $0x1c0] ss:$24 sps:$4 sm:$0xff]  }
  0xf0   :  { %2118 = vmatprep.subr.bf16.mxu1 %v3800_v7  ;;  %v3893_v7 = vld [vmem:[#allocation2 + $0x194] ss:$24 sps:$4 sm:$0xff]  }
  0xf1   :  { %2076 = vmatpush2.bf16.msra.mxu0 %v3795_v8  ;;  %v3888_v8 = vld [vmem:[#allocation2 + $0x4c0] ss:$24 sps:$4 sm:$0xff]  }
  0xf2   :  { %2131 = vmatprep.subr.bf16.mxu0 %v3803_v10  ;;  %v3896_v10 = vld [vmem:[#allocation2 + $0x494] ss:$24 sps:$4 sm:$0xff]  }
  0xf3   :  { %2119 = vmatpush2.bf16.msra.mxu1 %v3798_v11  ;;  %v3891_v11 = vld [vmem:[#allocation2 + $0x190] ss:$24 sps:$4 sm:$0xff]  }
  0xf4   :  { %2078 = vmatmul.mubr.bf16.vlgmr.msra.gmra.mxu0 %v4295_v6  ;;  %2174 = vmatprep.subr.bf16.mxu1 %v3806_v12  ;;  %v3818_v6 = vld [vmem:[#allocation2 + $0x404] ss:$24 sps:$4 sm:$0xff]  }
  0xf5   :  { %2132 = vmatpush1.bf16.msra.mxu0 %v3801_v13  ;;  %2163 = vmatprep.mubr.bf16.mxu0 %v4119_v18  ;;  %v3899_v12 = vld [vmem:[#allocation2 + $0x764] ss:$24 sps:$4 sm:$0xff]   ;;  %v3894_v13 = vld [vmem:[#allocation2 + $0x490] ss:$24 sps:$4 sm:$0xff]   ;;  %v4121_v18 = vld [vmem:[%s4418_s0] ss:$24 sps:$4 sm:$0xff]  }
  0xf6   :  { %2121 = vmatmul.mubr.bf16.vlgmr.msra.gmra.mxu1 %v4308_v9  ;;  %2133 = vmatprep.subr.bf16.mxu0 %v3809_v14  ;;  %v3819_v9 = vld [vmem:[#allocation2 + $0xd0] ss:$24 sps:$4 sm:$0xff]   ;;  %v3920_v14 = vld [vmem:[#allocation6 + $0x74] ss:$8 sps:$4 sm:$0xff]  }
  0xf7   :  { %2175 = vmatpush1.bf16.msra.mxu1 %v3804_v15  ;;  %2206 = vmatprep.mubr.bf16.mxu1 %v4120_v21  ;;  %v3897_v15 = vld [vmem:[#allocation2 + $0x760] ss:$24 sps:$4 sm:$0xff]   ;;  %v4122_v21 = vld [vmem:[%s4418_s0 + $0x14] ss:$24 sps:$4 sm:$0xff]  }
  0xf8   :  { %2176 = vmatprep.subr.bf16.mxu1 %v3812_v16  ;;  %v3902_v16 = vld [vmem:[#allocation2 + $0x734] ss:$24 sps:$4 sm:$0xff]  }
  0xf9   :  { %2134 = vmatpush1.bf16.msra.mxu0 %v3807_v17  ;;  %v3918_v17 = vld [vmem:[#allocation6 + $0x70] ss:$8 sps:$4 sm:$0xff]  }
  0xfa   :  { %2135 = vmatprep.subr.bf16.mxu0 %v3815_v19  ;;  %v3926_v19 = vld [vmem:[#allocation6 + $0x64] ss:$8 sps:$4 sm:$0xff]  }
  0xfb   :  { %2177 = vmatpush1.bf16.msra.mxu1 %v3810_v20  ;;  %v3900_v20 = vld [vmem:[#allocation2 + $0x730] ss:$24 sps:$4 sm:$0xff]  }
  0xfc   :  { %2178 = vmatprep.subr.bf16.mxu1 %v3818_v6  ;;  %v4123_v6 = vld [vmem:[%s4418_s0 + $0x8] ss:$24 sps:$4 sm:$0xff]  }
  0xfd   :  { %2136 = vmatpush1.bf16.msra.mxu0 %v3813_v22  ;;  %v3905_v22 = vld [vmem:[#allocation2 + $0x704] ss:$24 sps:$4 sm:$0xff]  }
  0xfe   :  { %2137 = vmatprep.subr.bf16.mxu0 %v3821_v51  ;;  %v3924_v51 = vld [vmem:[#allocation6 + $0x60] ss:$8 sps:$4 sm:$0xff]  }
  0xff   :  { %2179 = vmatpush1.bf16.msra.mxu1 %v3816_v3  ;;  %v3932_v3 = vld [vmem:[#allocation6 + $0x54] ss:$8 sps:$4 sm:$0xff]  }
 0x100   :  { %2180 = vmatprep.subr.bf16.mxu1 %v3824_v23  ;;  %v3903_v23 = vld [vmem:[#allocation2 + $0x700] ss:$24 sps:$4 sm:$0xff]  }
 0x101   :  { %2138 = vmatpush1.bf16.msra.mxu0 %v3819_v9  ;;  %v3908_v9 = vld [vmem:[#allocation2 + $0x6d4] ss:$24 sps:$4 sm:$0xff]  }
 0x102   :  { %2139 = vmatprep.subr.bf16.mxu0 %v3827_v24  ;;  %v3930_v24 = vld [vmem:[#allocation6 + $0x50] ss:$8 sps:$4 sm:$0xff]  }
 0x103   :  { %2181 = vmatpush1.bf16.msra.mxu1 %v3822_v25  ;;  %v3938_v25 = vld [vmem:[#allocation6 + $0x44] ss:$8 sps:$4 sm:$0xff]  }
 0x104   :  { %2182 = vmatprep.subr.bf16.mxu1 %v3830_v26  ;;  %v3906_v26 = vld [vmem:[#allocation2 + $0x6d0] ss:$24 sps:$4 sm:$0xff]  }
 0x105   :  { %2140 = vmatpush1.bf16.msra.mxu0 %v3825_v27  ;;  %v3911_v27 = vld [vmem:[#allocation2 + $0x6a4] ss:$24 sps:$4 sm:$0xff]  }
 0x106   :  { %2141 = vmatprep.subr.bf16.mxu0 %v3833_v28  ;;  %v3936_v28 = vld [vmem:[#allocation6 + $0x40] ss:$8 sps:$4 sm:$0xff]  }
 0x107   :  { %2183 = vmatpush1.bf16.msra.mxu1 %v3828_v29  ;;  %v3944_v29 = vld [vmem:[#allocation6 + $0x34] ss:$8 sps:$4 sm:$0xff]  }
 0x108   :  { %2184 = vmatprep.subr.bf16.mxu1 %v3836_v30  ;;  %v3909_v30 = vld [vmem:[#allocation2 + $0x6a0] ss:$24 sps:$4 sm:$0xff]  }
 0x109   :  { %2142 = vmatpush1.bf16.msra.mxu0 %v3831_v31  ;;  %v3914_v31 = vld [vmem:[#allocation2 + $0x674] ss:$24 sps:$4 sm:$0xff]  }
 0x10a   :  { %2143 = vmatprep.subr.bf16.mxu0 %v3839_v32  ;;  %v3942_v32 = vld [vmem:[#allocation6 + $0x30] ss:$8 sps:$4 sm:$0xff]  }
 0x10b   :  { %2185 = vmatpush1.bf16.msra.mxu1 %v3834_v33  ;;  %v3950_v33 = vld [vmem:[#allocation6 + $0x24] ss:$8 sps:$4 sm:$0xff]  }
 0x10c   :  { %2186 = vmatprep.subr.bf16.mxu1 %v3842_v35  ;;  %v3917_v35 = vld [vmem:[#allocation2 + $0x644] ss:$24 sps:$4 sm:$0xff]  }
 0x10d   :  { %2144 = vmatpush1.bf16.msra.mxu0 %v3837_v34  ;;  %v3912_v34 = vld [vmem:[#allocation2 + $0x670] ss:$24 sps:$4 sm:$0xff]  }
 0x10e   :  { %2145 = vmatprep.subr.bf16.mxu0 %v3845_v37  ;;  %v3956_v37 = vld [vmem:[#allocation6 + $0x14] ss:$8 sps:$4 sm:$0xff]  }
 0x10f   :  { %2187 = vmatpush1.bf16.msra.mxu1 %v3840_v36  ;;  %v3948_v36 = vld [vmem:[#allocation6 + $0x20] ss:$8 sps:$4 sm:$0xff]  }
 0x110   :  { %2188 = vmatprep.subr.bf16.mxu1 %v3848_v39  ;;  %v3923_v39 = vld [vmem:[#allocation2 + $0x614] ss:$24 sps:$4 sm:$0xff]  }
 0x111   :  { %2146 = vmatpush1.bf16.msra.mxu0 %v3843_v38  ;;  %v3915_v38 = vld [vmem:[#allocation2 + $0x640] ss:$24 sps:$4 sm:$0xff]  }
 0x112   :  { %2147 = vmatprep.subr.bf16.mxu0 %v3851_v40  ;;  %v3954_v40 = vld [vmem:[#allocation6 + $0x10] ss:$8 sps:$4 sm:$0xff]  }
 0x113   :  { %2189 = vmatpush1.bf16.msra.mxu1 %v3846_v41  ;;  %v3962_v41 = vld [vmem:[#allocation6 + $0x4] ss:$8 sps:$4 sm:$0xff]  }
 0x114   :  { %2190 = vmatprep.subr.bf16.mxu1 %v3854_v42  ;;  %v3921_v42 = vld [vmem:[#allocation2 + $0x610] ss:$24 sps:$4 sm:$0xff]  }
 0x115   :  { %2148 = vmatpush2.bf16.msra.mxu0 %v3849_v43  ;;  %v3929_v43 = vld [vmem:[#allocation2 + $0x8e4] ss:$24 sps:$4 sm:$0xff]  }
 0x116   :  { %2149 = vmatprep.subr.bf16.mxu0 %v3857_v44  ;;  %v3960_v44 = vld [vmem:[#allocation6] ss:$8 sps:$4 sm:$0xff]  }
 0x117   :  { %2191 = vmatpush2.bf16.msra.mxu1 %v3852_v45  ;;  %v3968_v45 = vld [vmem:[#allocation6 + $0xf4] ss:$8 sps:$4 sm:$0xff]  }
 0x118   :  { %2192 = vmatprep.subr.bf16.mxu1 %v3860_v47  ;;  %v3935_v47 = vld [vmem:[#allocation2 + $0x8b4] ss:$24 sps:$4 sm:$0xff]  }
 0x119   :  { %2150 = vmatpush2.bf16.msra.mxu0 %v3855_v46  ;;  %v3927_v46 = vld [vmem:[#allocation2 + $0x8e0] ss:$24 sps:$4 sm:$0xff]  }
 0x11a   :  { %2151 = vmatprep.subr.bf16.mxu0 %v3863_v49  ;;  %v3974_v49 = vld [vmem:[#allocation6 + $0xe4] ss:$8 sps:$4 sm:$0xff]  }
 0x11b   :  { %2193 = vmatpush2.bf16.msra.mxu1 %v3858_v48  ;;  %v3966_v48 = vld [vmem:[#allocation6 + $0xf0] ss:$8 sps:$4 sm:$0xff]  }
 0x11c   :  { %2194 = vmatprep.subr.bf16.mxu1 %v3866_v52  ;;  %v3941_v52 = vld [vmem:[#allocation2 + $0x884] ss:$24 sps:$4 sm:$0xff]  }
 0x11d   :  { %2152 = vmatpush2.bf16.msra.mxu0 %v3861_v50  ;;  %v3933_v50 = vld [vmem:[#allocation2 + $0x8b0] ss:$24 sps:$4 sm:$0xff]  }
 0x11e   :  { %2153 = vmatprep.subr.bf16.mxu0 %v3869_v53  ;;  %v3972_v53 = vld [vmem:[#allocation6 + $0xe0] ss:$8 sps:$4 sm:$0xff]  }
 0x11f   :  { %2195 = vmatpush2.bf16.msra.mxu1 %v3864_v54  ;;  %v3977_v54 = vld [vmem:[#allocation6 + $0xd4] ss:$8 sps:$4 sm:$0xff]  }
 0x120   :  { %2196 = vmatprep.subr.bf16.mxu1 %v3872_v55  ;;  %v3939_v55 = vld [vmem:[#allocation2 + $0x880] ss:$24 sps:$4 sm:$0xff]  }
 0x121   :  { %2154 = vmatpush2.bf16.msra.mxu0 %v3867_v56  ;;  %v3947_v56 = vld [vmem:[#allocation2 + $0x854] ss:$24 sps:$4 sm:$0xff]  }
 0x122   :  { %2155 = vmatprep.subr.bf16.mxu0 %v3875_v57  ;;  %v3975_v57 = vld [vmem:[#allocation6 + $0xd0] ss:$8 sps:$4 sm:$0xff]  }
 0x123   :  { %2197 = vmatpush2.bf16.msra.mxu1 %v3870_v58  ;;  %v3980_v58 = vld [vmem:[#allocation6 + $0xc4] ss:$8 sps:$4 sm:$0xff]  }
 0x124   :  { %2198 = vmatprep.subr.bf16.mxu1 %v3878_v59  ;;  %v3945_v59 = vld [vmem:[#allocation2 + $0x850] ss:$24 sps:$4 sm:$0xff]  }
 0x125   :  { %2156 = vmatpush2.bf16.msra.mxu0 %v3873_v60  ;;  %v3953_v60 = vld [vmem:[#allocation2 + $0x824] ss:$24 sps:$4 sm:$0xff]  }
 0x126   :  { %2157 = vmatprep.subr.bf16.mxu0 %v3881_v61  ;;  %v373_v61 = vlaneseq }
 0x127   :  { %2199 = vmatpush2.bf16.msra.mxu1 %v3876_v62  ;;  %v3978_v62 = vld [vmem:[#allocation6 + $0xc0] ss:$8 sps:$4 sm:$0xff]  }
 0x128   :  { %2200 = vmatprep.subr.bf16.mxu1 %v3884_v63  ;;  %v3983_v63 = vld [vmem:[#allocation6 + $0xb4] ss:$8 sps:$4 sm:$0xff]  }
 0x129   :  { %2158 = vmatpush2.bf16.msra.mxu0 %v3879_v0  ;;  %v3951_v0 = vld [vmem:[#allocation2 + $0x820] ss:$24 sps:$4 sm:$0xff]  }
 0x12a   :  { %2159 = vmatprep.subr.bf16.mxu0 %v3887_v1  ;;  %v3959_v1 = vld [vmem:[#allocation2 + $0x7f4] ss:$24 sps:$4 sm:$0xff]  }
 0x12b   :  { %2201 = vmatpush2.bf16.msra.mxu1 %v3882_v2  ;;  %v4332_v2 = vshrl.u32 %v373_v61, 7 }
 0x12c   :  { %2202 = vmatprep.subr.bf16.mxu1 %v3890_v4  ;;  %v3981_v4 = vld [vmem:[#allocation6 + $0xb0] ss:$8 sps:$4 sm:$0xff]  }
 0x12d   :  { %2160 = vmatpush2.bf16.msra.mxu0 %v3885_v5  ;;  %v3986_v5 = vld [vmem:[#allocation6 + $0xa4] ss:$8 sps:$4 sm:$0xff]   ;;  %vm3079_vm4 = vcmp.lt.s32.totalorder %v4332_v2, 2 }
 0x12e   :  { %2161 = vmatprep.subr.bf16.mxu0 %v3893_v7  ;;  %v3957_v7 = vld [vmem:[#allocation2 + $0x7f0] ss:$24 sps:$4 sm:$0xff]  }
 0x12f   :  { %2203 = vmatpush2.bf16.msra.mxu1 %v3888_v8 }
 0x130   :  { %2204 = vmatprep.subr.bf16.mxu1 %v3896_v10  ;;  %v3965_v10 = vld [vmem:[#allocation2 + $0x7c4] ss:$24 sps:$4 sm:$0xff]  }
 0x131   :  { %2162 = vmatpush2.bf16.msra.mxu0 %v3891_v11  ;;  %v375_v11 = vsub.s32 0, %v4332_v2 }
 0x132   :  { %2217 = vmatprep.subr.bf16.mxu0 %v3899_v12  ;;  %v3984_v12 = vld [vmem:[#allocation6 + $0xa0] ss:$8 sps:$4 sm:$0xff]  }
 0x133   :  { %2205 = vmatpush2.bf16.msra.mxu1 %v3894_v13  ;;  %v4335_v13 = vld [vmem:[#allocation4] sm:$0x3f] }
 0x134   :  { %2164 = vmatmul.mubr.bf16.vlgmr.msra.gmra.mxu0 %v4121_v18  ;;  %2878 = vmatprep.subr.bf16.mxu1 %v3920_v14  ;;  %v1907_v8 = vpop.f32.mrf.mxu0  ;;  %v3989_v14 = vld [vmem:[#allocation6 + $0x94] ss:$8 sps:$4 sm:$0xff]  }
 0x135   :  { %2218 = vmatpush1.bf16.msra.mxu0 %v3897_v15  ;;  %2249 = vmatprep.mubr.bf16.mxu0 %v4122_v21  ;;  %v379_v15 = vsub.s32 1, %v4332_v2  ;;  %v1950_v18 = vpop.f32.mrf.mxu1  ;;  %v3987_v21 = vld [vmem:[#allocation6 + $0x90] ss:$8 sps:$4 sm:$0xff]  }
 0x136   :  { %2207 = vmatmul.mubr.bf16.vlgmr.msra.gmra.mxu1 %v4123_v6  ;;  %2219 = vmatprep.subr.bf16.mxu0 %v3902_v16  ;;  %v3963_v16 = vld [vmem:[#allocation2 + $0x7c0] ss:$24 sps:$4 sm:$0xff]   ;;  %v3992_v6 = vld [vmem:[#allocation6 + $0x84] ss:$8 sps:$4 sm:$0xff]  }
 0x137   :  { %2879 = vmatpush1.bf16.msra.mxu1 %v3918_v17  ;;  %v1909_v17 = vpop.f32.mrf.mxu0 }
 0x138   :  { %2880 = vmatprep.subr.bf16.mxu1 %v3926_v19  ;;  %v3971_v19 = vld [vmem:[#allocation2 + $0x794] ss:$24 sps:$4 sm:$0xff]  }
 0x139   :  { %2220 = vmatpush1.bf16.msra.mxu0 %v3900_v20  ;;  %v376_v20 = vrot.slane %v4335_v13, %v375_v11 }
 0x13a   :  { %2221 = vmatprep.subr.bf16.mxu0 %v3905_v22  ;;  %v380_v22 = vrot.slane %v4335_v13, %v379_v15 }
 0x13b   :  { %2881 = vmatpush1.bf16.msra.mxu1 %v3924_v51  ;;  %v3969_v51 = vld [vmem:[#allocation2 + $0x790] ss:$24 sps:$4 sm:$0xff]  }
 0x13c   :  { %2882 = vmatprep.subr.bf16.mxu1 %v3932_v3  ;;  %v1911_v3 = vpop.f32.mrf.mxu0 }
 0x13d   :  { %2222 = vmatpush1.bf16.msra.mxu0 %v3903_v23  ;;  %v1952_v23 = vpop.f32.mrf.mxu1 }
 0x13e   :  { %2223 = vmatprep.subr.bf16.mxu0 %v3908_v9  ;;  %v3995_v9 = vld [vmem:[#allocation6 + $0x174] ss:$8 sps:$4 sm:$0xff]  }
 0x13f   :  { %2883 = vmatpush1.bf16.msra.mxu1 %v3930_v24  ;;  %v1908_v24 = vadd.f32 %v1907_v8, %v376_v20  ;;  %v4046_v8 = vld [vmem:[#allocation6 + $0x264] ss:$8 sps:$4 sm:$0xff]  }
 0x140   :  { %2884 = vmatprep.subr.bf16.mxu1 %v3938_v25  ;;  %v3990_v25 = vld [vmem:[#allocation6 + $0x80] ss:$8 sps:$4 sm:$0xff]  }
 0x141   :  { %2224 = vmatpush1.bf16.msra.mxu0 %v3906_v26  ;;  %v1910_v26 = vadd.f32 %v1909_v17, %v380_v22  ;;  %v4017_v17 = vld [vmem:[#allocation6 + $0x1f0] ss:$8 sps:$4 sm:$0xff]  }
 0x142   :  { %2225 = vmatprep.subr.bf16.mxu0 %v3911_v27  ;;  %v3993_v27 = vld [vmem:[#allocation6 + $0x170] ss:$8 sps:$4 sm:$0xff]  }
 0x143   :  { %2885 = vmatpush1.bf16.msra.mxu1 %v3936_v28  ;;  %v1913_v28 = vpop.f32.mrf.mxu0 }
 0x144   :  { %2886 = vmatprep.subr.bf16.mxu1 %v3944_v29  ;;  %v1954_v29 = vpop.f32.mrf.mxu1 }
 0x145   :  { %2226 = vmatpush1.bf16.msra.mxu0 %v3909_v30  ;;  %v3998_v30 = vld [vmem:[#allocation6 + $0x164] ss:$8 sps:$4 sm:$0xff]  }
 0x146   :  { %2227 = vmatprep.subr.bf16.mxu0 %v3914_v31  ;;  %v1951_v31 = vadd.f32 %v1950_v18, %v1908_v24  ;;  %v4022_v18 = vld [vmem:[#allocation6 + $0x1e4] ss:$8 sps:$4 sm:$0xff]  }
 0x147   :  { %2887 = vmatpush1.bf16.msra.mxu1 %v3942_v32  ;;  %v1912_v32 = vadd.f32 %v1911_v3, %v376_v20  ;;  %v4052_v20 = vld [vmem:[#allocation6 + $0x244] ss:$8 sps:$4 sm:$0xff]   ;;  %v4023_v3 = vld [vmem:[#allocation6 + $0x1d0] ss:$8 sps:$4 sm:$0xff]  }
 0x148   :  { %2888 = vmatprep.subr.bf16.mxu1 %v3950_v33  ;;  %v4058_v24 = vld [vmem:[#allocation6 + $0x224] ss:$8 sps:$4 sm:$0xff]  }
 0x149   :  { %2228 = vmatpush1.bf16.msra.mxu0 %v3912_v34  ;;  %v4124_v34 = vld [vmem:[%s4418_s0 + $0x10] ss:$24 sps:$4 sm:$0xff]  }
 0x14a   :  { %2229 = vmatprep.subr.bf16.mxu0 %v3917_v35  ;;  %v1953_v35 = vadd.f32 %v1952_v23, %v1910_v26  ;;  %v4028_v23 = vld [vmem:[#allocation6 + $0x1c4] ss:$8 sps:$4 sm:$0xff]   ;;  %v4031_v26 = vld [vmem:[#allocation6 + $0x1b4] ss:$8 sps:$4 sm:$0xff]  }
 0x14b   :  { %2889 = vmatpush1.bf16.msra.mxu1 %v3948_v36  ;;  %v1914_v36 = vadd.f32 %v1913_v28, %v380_v22  ;;  %v4050_v22 = vld [vmem:[#allocation6 + $0x240] ss:$8 sps:$4 sm:$0xff]   ;;  %v4061_v28 = vld [vmem:[#allocation6 + $0x214] ss:$8 sps:$4 sm:$0xff]  }
 0x14c   :  { %2890 = vmatprep.subr.bf16.mxu1 %v3956_v37 }
 0x14d   :  { %2230 = vmatpush1.bf16.msra.mxu0 %v3915_v38  ;;  %v3996_v38 = vld [vmem:[#allocation6 + $0x160] ss:$8 sps:$4 sm:$0xff]  }
 0x14e   :  { %2231 = vmatprep.subr.bf16.mxu0 %v3923_v39  ;;  %v1956_v39 = vpop.f32.mrf.mxu1 }
 0x14f   :  { %2891 = vmatpush1.bf16.msra.mxu1 %v3954_v40 }
 0x150   :  { %2892 = vmatprep.subr.bf16.mxu1 %v3962_v41  ;;  %v4001_v41 = vld [vmem:[#allocation6 + $0x154] ss:$8 sps:$4 sm:$0xff]  }
 0x151   :  { %2232 = vmatpush1.bf16.msra.mxu0 %v3921_v42  ;;  %v1955_v42 = vadd.f32 %v1954_v29, %v1912_v32  ;;  %v4029_v29 = vld [vmem:[#allocation6 + $0x1b0] ss:$8 sps:$4 sm:$0xff]   ;;  %v4064_v32 = vld [vmem:[#allocation6 + $0x204] ss:$8 sps:$4 sm:$0xff]  }
 0x152   :  { %2233 = vmatprep.subr.bf16.mxu0 %v3929_v43 }
 0x153   :  { %2893 = vmatpush1.bf16.msra.mxu1 %v3960_v44 }
 0x154   :  { %2894 = vmatprep.subr.bf16.mxu1 %v3968_v45  ;;  %v1957_v45 = vadd.f32 %v1956_v39, %v1914_v36  ;;  %v4062_v36 = vld [vmem:[#allocation6 + $0x200] ss:$8 sps:$4 sm:$0xff]   ;;  %v4035_v39 = vld [vmem:[#allocation6 + $0x190] ss:$8 sps:$4 sm:$0xff]  }
 0x155   :  { %2234 = vmatpush2.bf16.msra.mxu0 %v3927_v46 }
 0x156   :  { %2235 = vmatprep.subr.bf16.mxu0 %v3935_v47  ;;  %v3999_v47 = vld [vmem:[#allocation6 + $0x150] ss:$8 sps:$4 sm:$0xff]  }
 0x157   :  { %2895 = vmatpush2.bf16.msra.mxu1 %v3966_v48 }
 0x158   :  { %2896 = vmatprep.subr.bf16.mxu1 %v3974_v49  ;;  %v4004_v49 = vld [vmem:[#allocation6 + $0x144] ss:$8 sps:$4 sm:$0xff]  }
 0x159   :  { %2236 = vmatpush2.bf16.msra.mxu0 %v3933_v50 }
 0x15a   :  { %2237 = vmatprep.subr.bf16.mxu0 %v3941_v52  ;;  %v4002_v52 = vld [vmem:[#allocation6 + $0x140] ss:$8 sps:$4 sm:$0xff]  }
 0x15b   :  { %2897 = vmatpush2.bf16.msra.mxu1 %v3972_v53  ;;  %v4043_v53 = vld [vmem:[#allocation6 + $0x274] ss:$8 sps:$4 sm:$0xff]  }
 0x15c   :  { %2898 = vmatprep.subr.bf16.mxu1 %v3977_v54  ;;  %v4007_v54 = vld [vmem:[#allocation6 + $0x134] ss:$8 sps:$4 sm:$0xff]  }
 0x15d   :  { %2238 = vmatpush2.bf16.msra.mxu0 %v3939_v55  ;;  %v4005_v55 = vld [vmem:[#allocation6 + $0x130] ss:$8 sps:$4 sm:$0xff]  }
 0x15e   :  { %2239 = vmatprep.subr.bf16.mxu0 %v3947_v56  ;;  %v4010_v56 = vld [vmem:[#allocation6 + $0x124] ss:$8 sps:$4 sm:$0xff]  }
 0x15f   :  { %2899 = vmatpush2.bf16.msra.mxu1 %v3975_v57 }
 0x160   :  { %2900 = vmatprep.subr.bf16.mxu1 %v3980_v58  ;;  %v4008_v58 = vld [vmem:[#allocation6 + $0x120] ss:$8 sps:$4 sm:$0xff]  }
 0x161   :  { %2240 = vmatpush2.bf16.msra.mxu0 %v3945_v59 }
 0x162   :  { %2241 = vmatprep.subr.bf16.mxu0 %v3953_v60  ;;  %v4013_v60 = vld [vmem:[#allocation6 + $0x114] ss:$8 sps:$4 sm:$0xff]  }
 0x163   :  { %2901 = vmatpush2.bf16.msra.mxu1 %v3978_v62 }
 0x164   :  { %2902 = vmatprep.subr.bf16.mxu1 %v3983_v63  ;;  %v4011_v63 = vld [vmem:[#allocation6 + $0x110] ss:$8 sps:$4 sm:$0xff]  }
 0x165   :  { %2242 = vmatpush2.bf16.msra.mxu0 %v3951_v0 }
 0x166   :  { %2243 = vmatprep.subr.bf16.mxu0 %v3959_v1  ;;  %v4016_v1 = vld [vmem:[#allocation6 + $0x104] ss:$8 sps:$4 sm:$0xff]  }
 0x167   :  { %2903 = vmatpush2.bf16.msra.mxu1 %v3981_v4 }
 0x168   :  { %2904 = vmatprep.subr.bf16.mxu1 %v3986_v5  ;;  %v4041_v5 = vld [vmem:[#allocation6 + $0x270] ss:$8 sps:$4 sm:$0xff]  }
 0x169   :  { %2244 = vmatpush2.bf16.msra.mxu0 %v3957_v7 }
 0x16a   :  { %2245 = vmatprep.subr.bf16.mxu0 %v3965_v10  ;;  %v4014_v10 = vld [vmem:[#allocation6 + $0x100] ss:$8 sps:$4 sm:$0xff]  }
 0x16b   :  { %2905 = vmatpush2.bf16.msra.mxu1 %v3984_v12  ;;  %v4019_v12 = vld [vmem:[#allocation6 + $0x1f4] ss:$8 sps:$4 sm:$0xff]  }
 0x16c   :  { %2906 = vmatprep.subr.bf16.mxu1 %v3989_v14  ;;  %v4044_v14 = vld [vmem:[#allocation6 + $0x260] ss:$8 sps:$4 sm:$0xff]  }
 0x16d   :  { %2246 = vmatpush2.bf16.msra.mxu0 %v3963_v16  ;;  %v4049_v16 = vld [vmem:[#allocation6 + $0x254] ss:$8 sps:$4 sm:$0xff]  }
 0x16e   :  { %2247 = vmatprep.subr.bf16.mxu0 %v3971_v19  ;;  %v4047_v19 = vld [vmem:[#allocation6 + $0x250] ss:$8 sps:$4 sm:$0xff]  }
 0x16f   :  { %2907 = vmatpush2.bf16.msra.mxu1 %v3987_v21  ;;  %v4020_v21 = vld [vmem:[#allocation6 + $0x1e0] ss:$8 sps:$4 sm:$0xff]  }
 0x170   :  { %2908 = vmatprep.subr.bf16.mxu1 %v3992_v6  ;;  %v4025_v6 = vld [vmem:[#allocation6 + $0x1d4] ss:$8 sps:$4 sm:$0xff]  }
 0x171   :  { %2248 = vmatpush2.bf16.msra.mxu0 %v3969_v51  ;;  %v4055_v51 = vld [vmem:[#allocation6 + $0x234] ss:$8 sps:$4 sm:$0xff]  }
 0x172   :  { %2921 = vmatprep.subr.bf16.mxu0 %v3995_v9  ;;  %v4053_v9 = vld [vmem:[#allocation6 + $0x230] ss:$8 sps:$4 sm:$0xff]  }
 0x173   :  { %2909 = vmatpush2.bf16.msra.mxu1 %v3990_v25  ;;  %v4026_v25 = vld [vmem:[#allocation6 + $0x1c0] ss:$8 sps:$4 sm:$0xff]  }
 0x174   :  { %v1993_v33 = vpop.f32.mrf.mxu0  ;;  %2250 = vmatmul.mubr.bf16.vlgmr.msra.gmra.mxu0 %v4124_v34  ;;  %2964 = vmatprep.subr.bf16.mxu1 %v4043_v53 }
 0x175   :  { %v1994_v37 = vadd.f32 %v1993_v33, %v1951_v31  ;;  %2922 = vmatpush1.bf16.msra.mxu0 %v3993_v27  ;;  %v4056_v27 = vld [vmem:[#allocation6 + $0x220] ss:$8 sps:$4 sm:$0xff]   ;;  %v4059_v31 = vld [vmem:[#allocation6 + $0x210] ss:$8 sps:$4 sm:$0xff]  }
 0x176   :  { %v1995_v40 = vpop.f32.mrf.mxu0  ;;  %2923 = vmatprep.subr.bf16.mxu0 %v3998_v30  ;;  %v4034_v30 = vld [vmem:[#allocation6 + $0x1a4] ss:$8 sps:$4 sm:$0xff]   ;;  %v4032_v33 = vld [vmem:[#allocation6 + $0x1a0] ss:$8 sps:$4 sm:$0xff]   ;;  %v2036_v34 = vpop.f32.mrf.mxu1 }
 0x177   :  { %4089 = vtanh.f32 %v1994_v37  ;;  %v1996_v43 = vadd.f32 %v1995_v40, %v1953_v35  ;;  %v4037_v35 = vld [vmem:[#allocation6 + $0x194] ss:$8 sps:$4 sm:$0xff]  }
 0x178   :  { %v1997_v44 = vpop.f32.mrf.mxu0  ;;  %v4067_v37 = vld [vmem:[#allocation6 + $0x2f4] ss:$8 sps:$4 sm:$0xff]   ;;  %v2038_v40 = vpop.f32.mrf.mxu1 }
 0x179   :  { %4091 = vtanh.f32 %v1996_v43  ;;  %v1998_v46 = vadd.f32 %v1997_v44, %v1955_v42  ;;  %2924 = vmatpush1.bf16.msra.mxu0 %v3996_v38  ;;  %v383_v38 = vsub.s32 2, %v4332_v2  ;;  %v387_v42 = vsub.s32 3, %v4332_v2  ;;  %v4065_v43 = vld [vmem:[#allocation6 + $0x2f0] ss:$8 sps:$4 sm:$0xff]   ;;  %v4070_v44 = vld [vmem:[#allocation6 + $0x2e4] ss:$8 sps:$4 sm:$0xff]  }
 0x17a   :  { %v1999_v48 = vpop.f32.mrf.mxu0  ;;  %2925 = vmatprep.subr.bf16.mxu0 %v4001_v41  ;;  %v4040_v41 = vld [vmem:[#allocation6 + $0x184] ss:$8 sps:$4 sm:$0xff]  }
 0x17b   :  { %4093 = vtanh.f32 %v1998_v46  ;;  %v2000_v50 = vadd.f32 %v1999_v48, %v1957_v45  ;;  %v384_v45 = vrot.slane %v4335_v13, %v383_v38  ;;  %v4038_v46 = vld [vmem:[#allocation6 + $0x180] ss:$8 sps:$4 sm:$0xff]   ;;  %v388_v48 = vrot.slane %v4335_v13, %v387_v42 }
 0x17d   :  { %4095 = vtanh.f32 %v2000_v50  ;;  %2926 = vmatpush1.bf16.msra.mxu0 %v3999_v47  ;;  %v2040_v47 = vpop.f32.mrf.mxu1  ;;  %v2037_v50 = vadd.f32 %v2036_v34, %v384_v45  ;;  %v2039_v53 = vadd.f32 %v2038_v40, %v388_v48 }
 0x17e   :  { %2927 = vmatprep.subr.bf16.mxu0 %v4004_v49  ;;  %v4068_v49 = vld [vmem:[#allocation6 + $0x2e0] ss:$8 sps:$4 sm:$0xff]  }
 0x181   :  { %2928 = vmatpush1.bf16.msra.mxu0 %v4002_v52  ;;  %v2042_v52 = vpop.f32.mrf.mxu1 }
 0x182   :  { %2929 = vmatprep.subr.bf16.mxu0 %v4007_v54 }
 0x184   :  { %v4090_v57 = vpop.eup %4089 }
 0x185   :  { %2272 = vst [vmem:[%s4424_s6] sm:$0xff] %v4090_v57  ;;  %2930 = vmatpush1.bf16.msra.mxu0 %v4005_v55  ;;  %v4073_v55 = vld [vmem:[#allocation6 + $0x2d4] ss:$8 sps:$4 sm:$0xff]  }
 0x186   :  { %v4092_v59 = vpop.eup %4091  ;;  %2931 = vmatprep.subr.bf16.mxu0 %v4010_v56 }
 0x187   :  { %2273 = vst [vmem:[%s4424_s6 + $0x8] sm:$0xff] %v4092_v59 }
 0x188   :  { %v4094_v62 = vpop.eup %4093 }
 0x189   :  { %2278 = vst [vmem:[%s4424_s6 + $0x30] sm:$0xff] %v4094_v62  ;;  %2932 = vmatpush1.bf16.msra.mxu0 %v4008_v58  ;;  %v2284_v7 = vpack.c.bf16 %v4094_v62, %v4090_v57  ;;  %v4071_v57 = vld [vmem:[#allocation6 + $0x2d0] ss:$8 sps:$4 sm:$0xff]  }
 0x18a   :  { %v4096_v0 = vpop.eup %4095  ;;  %2933 = vmatprep.subr.bf16.mxu0 %v4013_v60  ;;  %v2041_v60 = vadd.f32 %v2040_v47, %v384_v45 }
 0x18b   :  { %2279 = vst [vmem:[%s4424_s6 + $0x38] sm:$0xff] %v4096_v0  ;;  %v2285_v4 = vpack.c.bf16 %v4096_v0, %v4092_v59 }
 0x18d   :  { %2910 = vmatprep.mubr.bf16.mxu1 %v2285_v4  ;;  %2934 = vmatpush1.bf16.msra.mxu0 %v4011_v63  ;;  %v4076_v4 = vld [vmem:[#allocation6 + $0x2c4] ss:$8 sps:$4 sm:$0xff]  }
 0x18e   :  { %2911 = vmatmul.mubr.bf16.vlgmr.msra.gmra.mxu1 %v2284_v7  ;;  %2935 = vmatprep.subr.bf16.mxu0 %v4016_v1 }
 0x18f   :  { %2965 = vmatpush1.bf16.msra.mxu1 %v4041_v5  ;;  %v2043_v5 = vadd.f32 %v2042_v52, %v388_v48 }
 0x190   :  { %2966 = vmatprep.subr.bf16.mxu1 %v4046_v8 }
 0x191   :  { %2936 = vmatpush1.bf16.msra.mxu0 %v4014_v10  ;;  %v4074_v10 = vld [vmem:[#allocation6 + $0x2c0] ss:$8 sps:$4 sm:$0xff]  }
 0x192   :  { %2937 = vmatprep.subr.bf16.mxu0 %v4019_v12 }
 0x193   :  { %2967 = vmatpush1.bf16.msra.mxu1 %v4044_v14 }
 0x194   :  { %2968 = vmatprep.subr.bf16.mxu1 %v4049_v16 }
 0x195   :  { %2938 = vmatpush2.bf16.msra.mxu0 %v4017_v17 }
 0x196   :  { %2939 = vmatprep.subr.bf16.mxu0 %v4022_v18 }
 0x197   :  { %2969 = vmatpush1.bf16.msra.mxu1 %v4047_v19  ;;  %v4079_v19 = vld [vmem:[#allocation6 + $0x2b4] ss:$8 sps:$4 sm:$0xff]  }
 0x198   :  { %2970 = vmatprep.subr.bf16.mxu1 %v4052_v20 }
 0x199   :  { %2940 = vmatpush2.bf16.msra.mxu0 %v4020_v21  ;;  %v4077_v21 = vld [vmem:[#allocation6 + $0x2b0] ss:$8 sps:$4 sm:$0xff]  }
 0x19a   :  { %2941 = vmatprep.subr.bf16.mxu0 %v4025_v6  ;;  %v4082_v6 = vld [vmem:[#allocation6 + $0x2a4] ss:$8 sps:$4 sm:$0xff]  }
 0x19b   :  { %2971 = vmatpush1.bf16.msra.mxu1 %v4050_v22  ;;  %v4080_v22 = vld [vmem:[#allocation6 + $0x2a0] ss:$8 sps:$4 sm:$0xff]  }
 0x19c   :  { %2972 = vmatprep.subr.bf16.mxu1 %v4055_v51  ;;  %v4085_v51 = vld [vmem:[#allocation6 + $0x294] ss:$8 sps:$4 sm:$0xff]  }
 0x19d   :  { %2942 = vmatpush2.bf16.msra.mxu0 %v4023_v3  ;;  %v4083_v3 = vld [vmem:[#allocation6 + $0x290] ss:$8 sps:$4 sm:$0xff]  }
 0x19e   :  { %2943 = vmatprep.subr.bf16.mxu0 %v4028_v23 }
 0x19f   :  { %2973 = vmatpush1.bf16.msra.mxu1 %v4053_v9 }
 0x1a0   :  { %2974 = vmatprep.subr.bf16.mxu1 %v4058_v24  ;;  %v4088_v24 = vld [vmem:[#allocation6 + $0x284] ss:$8 sps:$4 sm:$0xff]  }
 0x1a1   :  { %2944 = vmatpush2.bf16.msra.mxu0 %v4026_v25  ;;  %v4086_v25 = vld [vmem:[#allocation6 + $0x280] ss:$8 sps:$4 sm:$0xff]  }
 0x1a2   :  { %2945 = vmatprep.subr.bf16.mxu0 %v4031_v26 }
 0x1a3   :  { %2975 = vmatpush1.bf16.msra.mxu1 %v4056_v27 }
 0x1a4   :  { %2976 = vmatprep.subr.bf16.mxu1 %v4061_v28 }
 0x1a5   :  { %2946 = vmatpush2.bf16.msra.mxu0 %v4029_v29 }
 0x1a6   :  { %2947 = vmatprep.subr.bf16.mxu0 %v4034_v30 }
 0x1a7   :  { %2977 = vmatpush1.bf16.msra.mxu1 %v4059_v31  ;;  %v391_v31 = vsub.s32 4, %v4332_v2 }
 0x1a8   :  { %2978 = vmatprep.subr.bf16.mxu1 %v4064_v32  ;;  %v395_v32 = vsub.s32 5, %v4332_v2 }
 0x1a9   :  { %2948 = vmatpush2.bf16.msra.mxu0 %v4032_v33 }
 0x1aa   :  { %2949 = vmatprep.subr.bf16.mxu0 %v4037_v35  ;;  %v392_v35 = vrot.slane %v4335_v13, %v391_v31  ;;  %v3050_v31 = vld [vmem:[%s4419_s1] sm:$0xff] }
 0x1ab   :  { %2979 = vmatpush1.bf16.msra.mxu1 %v4062_v36  ;;  %v396_v36 = vrot.slane %v4335_v13, %v395_v32 }
 0x1ac   :  { %2980 = vmatprep.subr.bf16.mxu1 %v4067_v37 }
 0x1ad   :  { %2950 = vmatpush2.bf16.msra.mxu0 %v4035_v39 }
 0x1ae   :  { %2951 = vmatprep.subr.bf16.mxu0 %v4040_v41 }
 0x1af   :  { %2981 = vmatpush2.bf16.msra.mxu1 %v4065_v43 }
 0x1b0   :  { %2982 = vmatprep.subr.bf16.mxu1 %v4070_v44 }
 0x1b1   :  { %2952 = vmatpush2.bf16.msra.mxu0 %v4038_v46 }
 0x1b3   :  { %2983 = vmatpush2.bf16.msra.mxu1 %v4068_v49 }
 0x1b4   :  { %v2079_v54 = vpop.f32.mrf.mxu0  ;;  %2984 = vmatprep.subr.bf16.mxu1 %v4073_v55 }
 0x1b5   :  { %v2080_v56 = vadd.f32 %v2079_v54, %v2037_v50 }
 0x1b6   :  { %v2081_v58 = vpop.f32.mrf.mxu0  ;;  %v2122_v59 = vpop.f32.mrf.mxu1 }
 0x1b7   :  { %v2082_v62 = vadd.f32 %v2081_v58, %v2039_v53  ;;  %v2123_v63 = vadd.f32 %v2122_v59, %v2080_v56  ;;  %2985 = vmatpush2.bf16.msra.mxu1 %v4071_v57 }
 0x1b8   :  { %v2083_v0 = vpop.f32.mrf.mxu0  ;;  %v2124_v1 = vpop.f32.mrf.mxu1  ;;  %2986 = vmatprep.subr.bf16.mxu1 %v4076_v4 }
 0x1b9   :  { %4097 = vtanh.f32 %v2123_v63  ;;  %v2084_v7 = vadd.f32 %v2083_v0, %v2041_v60  ;;  %v2125_v8 = vadd.f32 %v2124_v1, %v2082_v62  ;;  %v4219_v1 = vmov 0  }
 0x1ba   :  { %v2085_v12 = vpop.f32.mrf.mxu0  ;;  %v2126_v14 = vpop.f32.mrf.mxu1  ;;  %3503 = vset.pattern.permute.xlu0 %v4219_v1 }
 0x1bb   :  { %4099 = vtanh.f32 %v2125_v8  ;;  %v2086_v16 = vadd.f32 %v2085_v12, %v2043_v5  ;;  %v2127_v17 = vadd.f32 %v2126_v14, %v2084_v7  ;;  %2987 = vmatpush2.bf16.msra.mxu1 %v4074_v10  ;;  %v2386_v5 = vld [vmem:[#allocation7] sm:$0x3] }
 0x1bc   :  { %v2128_v18 = vpop.f32.mrf.mxu1  ;;  %2988 = vmatprep.subr.bf16.mxu1 %v4079_v19  ;;  %v2391_v10 = vrot.slane %v2386_v5, %v375_v11 }
 0x1bd   :  { %4101 = vtanh.f32 %v2127_v17  ;;  %v2129_v20 = vadd.f32 %v2128_v18, %v2086_v16  ;;  %v2395_v16 = vrot.slane %v2386_v5, %v379_v15  ;;  %v3012_v17 = vand.u32 127, %v373_v61 }
 0x1bf   :  { %4103 = vtanh.f32 %v2129_v20  ;;  %2989 = vmatpush2.bf16.msra.mxu1 %v4077_v21  ;;  %vm3014_vm0 = vcmp.lt.s32.totalorder %v3012_v17, 4 }
 0x1c0   :  { %2990 = vmatprep.subr.bf16.mxu1 %v4082_v6 }
 0x1c3   :  { %2991 = vmatpush2.bf16.msra.mxu1 %v4080_v22 }
 0x1c4   :  { %2992 = vmatprep.subr.bf16.mxu1 %v4085_v51 }
 0x1c6   :  { %v4098_v23 = vpop.eup %4097 }
 0x1c7   :  { %2274 = vst [vmem:[%s4424_s6 + $0x10] sm:$0xff] %v4098_v23  ;;  %2993 = vmatpush2.bf16.msra.mxu1 %v4083_v3 }
 0x1c8   :  { %v4100_v9 = vpop.eup %4099  ;;  %2994 = vmatprep.subr.bf16.mxu1 %v4088_v24 }
 0x1c9   :  { %2275 = vst [vmem:[%s4424_s6 + $0x18] sm:$0xff] %v4100_v9 }
 0x1ca   :  { %v4102_v26 = vpop.eup %4101 }
 0x1cb   :  { %2280 = vst [vmem:[%s4424_s6 + $0x40] sm:$0xff] %v4102_v26  ;;  %2995 = vmatpush2.bf16.msra.mxu1 %v4086_v25  ;;  %v2286_v29 = vpack.c.bf16 %v4102_v26, %v4098_v23 }
 0x1cc   :  { %v4104_v27 = vpop.eup %4103 }
 0x1cd   :  { %2281 = vst [vmem:[%s4424_s6 + $0x48] sm:$0xff] %v4104_v27  ;;  %v2287_v28 = vpack.c.bf16 %v4104_v27, %v4100_v9 }
 0x1cf   :  { %2953 = vmatprep.mubr.bf16.mxu0 %v2287_v28 }
 0x1d0   :  { %2954 = vmatmul.mubr.bf16.vlgmr.msra.gmra.mxu0 %v2286_v29 }
 0x1f4   :  { %v2165_v30 = vpop.f32.mrf.mxu0 }
 0x1f5   :  { %v2166_v39 = vadd.f32 %v2165_v30, %v392_v35 }
 0x1f6   :  { %v2167_v33 = vpop.f32.mrf.mxu0  ;;  %v2208_v34 = vpop.f32.mrf.mxu1 }
 0x1f7   :  { %v2168_v40 = vadd.f32 %v2167_v33, %v396_v36  ;;  %v2209_v43 = vadd.f32 %v2208_v34, %v2166_v39 }
 0x1f8   :  { %v2169_v37 = vpop.f32.mrf.mxu0  ;;  %v2210_v38 = vpop.f32.mrf.mxu1 }
 0x1f9   :  { %v2170_v44 = vadd.f32 %v2169_v37, %v392_v35  ;;  %v2211_v46 = vadd.f32 %v2210_v38, %v2168_v40  ;;  %v3013_v37 = vadd.s32 128, %v3012_v17 }
 0x1fa   :  { %v2171_v41 = vpop.f32.mrf.mxu0  ;;  %v2212_v42 = vpop.f32.mrf.mxu1 }
 0x1fb   :  { %v2172_v47 = vadd.f32 %v2171_v41, %v396_v36  ;;  %v2213_v52 = vadd.f32 %v2212_v42, %v2170_v44 }
 0x1fc   :  { %v2214_v49 = vpop.f32.mrf.mxu1 }
 0x1fd   :  { %v2215_v55 = vadd.f32 %v2214_v49, %v2172_v47 }
 0x234   :  { %v2251_v45 = vpop.f32.mrf.mxu0 }
 0x235   :  { %v2252_v48 = vadd.f32 %v2251_v45, %v2209_v43  ;;  %v4220_v45 = vmov 0.0  }
 0x236   :  { %v2253_v50 = vpop.f32.mrf.mxu0  ;;  %3087 = vst.msk [vmem:[%s4426_s8 + $0x8] sm:$0xff] %vm3085_vm3, %v4220_v45 }
 0x237   :  { %4105 = vtanh.f32 %v2252_v48  ;;  %v2254_v53 = vadd.f32 %v2253_v50, %v2211_v46 }
 0x238   :  { %v2255_v54 = vpop.f32.mrf.mxu0 }
 0x239   :  { %4107 = vtanh.f32 %v2254_v53  ;;  %v2256_v13 = vadd.f32 %v2255_v54, %v2213_v52 }
 0x23a   :  { %v2257_v56 = vpop.f32.mrf.mxu0 }
 0x23b   :  { %4109 = vtanh.f32 %v2256_v13  ;;  %v2258_v57 = vadd.f32 %v2257_v56, %v2215_v55 }
 0x23d   :  { %4111 = vtanh.f32 %v2258_v57 }
 0x244   :  { %v4106_v58 = vpop.eup %4105 }
 0x245   :  { %2276 = vst [vmem:[%s4424_s6 + $0x20] sm:$0xff] %v4106_v58 }
 0x246   :  { %v4108_v59 = vpop.eup %4107 }
 0x247   :  { %2277 = vst [vmem:[%s4424_s6 + $0x28] sm:$0xff] %v4108_v59 }
 0x248   :  { %v4110_v60 = vpop.eup %4109 }
 0x249   :  { %2282 = vst [vmem:[%s4424_s6 + $0x50] sm:$0xff] %v4110_v60  ;;  %v2288_v0 = vpack.c.bf16 %v4110_v60, %v4106_v58 }
 0x24a   :  { %v4112_v62 = vpop.eup %4111 }
 0x24b   :  { %2283 = vst [vmem:[%s4424_s6 + $0x58] sm:$0xff] %v4112_v62  ;;  %v2289_v63 = vpack.c.bf16 %v4112_v62, %v4108_v59 }
 0x24d   :  { %2996 = vmatprep.mubr.bf16.mxu1 %v2289_v63 }
 0x24e   :  { %2997 = vmatmul.mubr.bf16.vlgmr.msra.gmra.mxu1 %v2288_v0  ;;  %v2912_v4 = vpop.f32.mrf.mxu1 }
 0x24f   :  { %v2913_v18 = vadd.f32 %v2912_v4, %v2391_v10 }
 0x250   :  { %v2914_v7 = vpop.f32.mrf.mxu1 }
 0x251   :  { %v2915_v21 = vadd.f32 %v2914_v7, %v2395_v16 }
 0x252   :  { %v2916_v12 = vpop.f32.mrf.mxu1 }
 0x253   :  { %v2917_v51 = vadd.f32 %v2916_v12, %v2391_v10 }
 0x254   :  { %v2918_v19 = vpop.f32.mrf.mxu1 }
 0x255   :  { %v2919_v11 = vadd.f32 %v2918_v19, %v2395_v16 }
 0x290   :  { %v2955_v8 = vpop.f32.mrf.mxu0 }
 0x291   :  { %v2956_v6 = vadd.f32 %v2955_v8, %v2913_v18 }
 0x292   :  { %v2957_v14 = vpop.f32.mrf.mxu0 }
 0x293   :  { %v2958_v3 = vadd.f32 %v2957_v14, %v2915_v21 }
 0x294   :  { %v2959_v20 = vpop.f32.mrf.mxu0 }
 0x295   :  { %v2960_v25 = vadd.f32 %v2959_v20, %v2917_v51 }
 0x296   :  { %v2961_v9 = vpop.f32.mrf.mxu0 }
 0x297   :  { %v2962_v27 = vadd.f32 %v2961_v9, %v2919_v11 }
 0x30e   :  { %v2998_v22 = vpop.f32.mrf.mxu1 }
 0x30f   :  { %v2999_v23 = vadd.f32 %v2998_v22, %v2956_v6 }
 0x310   :  { %v3000_v24 = vpop.f32.mrf.mxu1 }
 0x311   :  { %3007 = vst [vmem:[%s4425_s7] sm:$0xff] %v2999_v23  ;;  %v3001_v15 = vadd.f32 %v3000_v24, %v2958_v3  ;;  %v3016_v61 = vsel %vm3014_vm0, %v2999_v23, -inf }
 0x312   :  { %v3002_v26 = vpop.f32.mrf.mxu1  ;;  %3021 = vmax.xlane.f32.xlu0 %v3016_v61 }
 0x313   :  { %3008 = vst [vmem:[%s4425_s7 + $0x8] sm:$0xff] %v3001_v15  ;;  %v3003_v28 = vadd.f32 %v3002_v26, %v2960_v25 }
 0x314   :  { %v3004_v29 = vpop.f32.mrf.mxu1 }
 0x315   :  { %3009 = vst [vmem:[%s4425_s7 + $0x10] sm:$0xff] %v3003_v28  ;;  %v3005_v30 = vadd.f32 %v3004_v29, %v2962_v27 }
 0x317   :  { %3010 = vst [vmem:[%s4425_s7 + $0x18] sm:$0xff] %v3005_v30 }
 0x328   :  { %3053 = vperm.xlu0 %3503, %v3050_v31  }
 0x39b   :  { %v3022_v32 = vpop.xlane.xlu0 %3021 }
 0x39c   :  { %v3026_v33 = vsub.f32 %v3016_v61, %v3022_v32  ;;  %v3027_v34 = vsub.f32 -inf, %v3022_v32 }
 0x39e   :  { %v3030_v35 = vmul.f32 1.442695, %v3026_v33  ;;  %v3032_v36 = vmul.f32 1.442695, %v3027_v34 }
 0x3a0   :  { %4113 = vpow2.f32 %v3030_v35 }
 0x3a1   :  { %4115 = vpow2.f32 %v3032_v36 }
 0x3a3   :  { %v3054_v38 = vpop.permute.xlu0 %3053 }
 0x3a4   :  { %vm3058_vm1 = vcmp.eq.s32.totalorder %v3012_v17, %v3054_v38  ;;  %vm3059_vm2 = vcmp.eq.s32.totalorder %v3013_v37, %v3054_v38 }
 0x3a5   :  { %v3062_v42 = vsel %vm3058_vm1, %v2999_v23, 0.0  ;;  %v3063_v43 = vsel %vm3059_vm2, %v3001_v15, 0.0 }
 0x3a6   :  { %v3066_v44 = vadd.f32 %v3063_v43, %v3062_v42 }
 0x3ad   :  { %v4114_v39 = vpop.eup %4113 }
 0x3ae   :  { %v4116_v40 = vpop.eup %4115 }
 0x3af   :  { %v3038_v41 = vadd.f32 %v4116_v40, %v4114_v39 }
 0x3b1   :  { %3039 = vadd.xlane.f32.xlu1 %v3038_v41 }
 0x3b5   :  { %3067 = vadd.xlane.f32.xlu1 %v3066_v44 }
 0x43a   :  { %v3040_v46 = vpop.xlane.xlu1 %3039 }
 0x43b   :  { %4117 = vlog2.f32 %v3040_v46 }
 0x43e   :  { %v3068_v50 = vpop.xlane.xlu1 %3067 }
 0x448   :  { %v4118_v47 = vpop.eup %4117 }
 0x449   :  { %v3045_v48 = vmul.f32 0.6931472, %v4118_v47 }
 0x44b   :  { %v3048_v49 = vadd.f32 %v3045_v48, %v3022_v32 }
 0x44d   :  { %v3081_v52 = vsub.f32 %v3048_v49, %v3068_v50 }
 0x44f   :  { %v3083_v53 = vsel %vm3079_vm4, %v3081_v52, 0.0 }
 0x450   :  { %3086 = vst.msk [vmem:[%s4426_s8] sm:$0xff] %vm3085_vm3, %v3083_v53 }
 0x451   :  { %3100 = vsyncpa [#allocation3], 1 }
 0x452   :  { %3101 = vsyncpa [#allocation5], 1 }
 0x453   :  { %3102 = vsyncpa [#allocation8], 1 }

</bundles_post_ra>
